<compile_context>
chip_gen: v6e
topology: v6e:2x2x1
jax: 0.10.0
libtpu: 0.0.40
codegen_flags: <defaults>
</compile_context>

<pallas_src>
import math

import jax
import jax.numpy as jnp
from jax.experimental import pallas as pl
from jax.experimental.pallas import tpu as pltpu


# ---------------------------------------------------------------------------
# Generation-aware VMEM budgeting (v7x: 64 MiB / TC, v5e/v6e: 128 MiB).
# ---------------------------------------------------------------------------
def _vmem_capacity_bytes():
    try:
        return int(pltpu.get_tpu_info().vmem_capacity_bytes)
    except Exception:
        return 64 * 1024 * 1024  # conservative default (v7x per-TensorCore)


def _vmem_budgets():
    cap = _vmem_capacity_bytes()
    block_budget = int(cap * 0.45)  # double-buffered input + output blocks
    vmem_limit = min(int(cap * 0.75), 128 * 1024 * 1024)
    return block_budget, vmem_limit


def _round_up(v, m):
    return -(-v // m) * m


# ---------------------------------------------------------------------------
# Kernels
# ---------------------------------------------------------------------------
def _dense_kernel(x_ref, w_ref, o_ref):
    # x_ref: (Cin, TL) activations | w_ref: (Cout, Cin) | o_ref: (Cout, TL)
    o_ref[...] = jnp.dot(
        w_ref[...], x_ref[...], preferred_element_type=jnp.float32
    ).astype(o_ref.dtype)


def _make_strided_kernel(cin, th_o, stride, w, wo):
    """1x1 conv with stride folded into the kernel (no standalone gather)."""

    def kernel(x_ref, w_ref, o_ref):
        # x_ref: (Cin, TH_o*stride, W) raw NCHW rows covering TH_o output rows
        xv = x_ref[...]
        # H-stride: keep every `stride`-th input row (sublane select, cheap).
        xv = xv.reshape(cin, th_o, stride, w)[:, :, 0, :]
        # W-stride: keep every `stride`-th column (lane relayout; XLU/VMEM
        # work that hides under the HBM-bound pipeline).
        xv = xv.reshape(cin, th_o, wo, stride)[:, :, :, 0]
        xg = xv.reshape(cin, th_o * wo)  # (Cin, TH_o*Wo), lane-dense
        o_ref[...] = jnp.dot(
            w_ref[...], xg, preferred_element_type=jnp.float32
        ).astype(o_ref.dtype)

    return kernel


# ---------------------------------------------------------------------------
# Tile pickers
# ---------------------------------------------------------------------------
def _pick_row_tile(ho, wo, stride, w, cin, cout, itemsize, budget, n):
    # Smallest row-block granule that keeps every BlockSpec tile-rule
    # compliant when a block does not span the full array:
    #   * input rows  (TH_o * stride) multiple of 8
    #   * output lanes (TH_o * Wo)    multiple of 128
    unit = max(8, 128 // math.gcd(wo, 128))
    per_row = 2 * itemsize * (cin * stride * w + cout * wo)  # double-buffered
    th = (budget // max(per_row, 1)) // unit * unit
    th = ho if th >= ho else max(unit, th)
    if n == 1 and ho >= 2 * unit:
        # v7x megacore: give the spatial axis >= 2 blocks when the batch
        # cannot feed both TensorCores.
        th = min(th, _round_up((ho + 1) // 2, unit))
    return th


def _pick_lane_tile(l, cin, cout, itemsize, budget):
    if l <= 128:
        return l  # full extent (tile-rule compliant)
    per_lane = 2 * itemsize * (cin + cout)
    tl = (budget // max(per_lane, 1)) // 128 * 128
    return max(128, min(tl, _round_up(l, 128), 8192))


# ---------------------------------------------------------------------------
# Wrappers
# ---------------------------------------------------------------------------
def _conv1x1_strided(x, wm, stride):
    """Primary path: stride folded into the kernel (H/W divisible by stride)."""
    n, cin, h, w = x.shape
    cout = wm.shape[0]
    ho, wo = h // stride, w // stride
    l = ho * wo
    itemsize = jnp.dtype(x.dtype).itemsize
    budget, vmem_limit = _vmem_budgets()

    th_o = _pick_row_tile(ho, wo, stride, w, cin, cout, itemsize, budget, n)
    th_i = th_o * stride
    nb = pl.cdiv(ho, th_o)

    kernel = _make_strided_kernel(cin, th_o, stride, w, wo)
    flops = 2 * n * cout * cin * l
    bytes_accessed = itemsize * (n * cin * h * w + cout * cin + n * cout * l)

    out = pl.pallas_call(
        kernel,
        out_shape=jax.ShapeDtypeStruct((n, cout, l), x.dtype),
        grid=(n, nb),
        in_specs=[
            # Raw NCHW rows: strides are applied in-kernel, so no separate
            # subsample pass ever touches HBM.
            # TODO(synk): also skip the unused input rows at the DMA level
            # (strided row gather) to halve the activation read for stride 2.
            pl.BlockSpec((None, cin, th_i, w), lambda b, i: (b, 0, i, 0)),
            # Weight: constant block index -> DMA'd once, stays VMEM resident.
            pl.BlockSpec((cout, cin), lambda b, i: (0, 0)),
        ],
        out_specs=pl.BlockSpec((None, cout, th_o * wo), lambda b, i: (b, 0, i)),
        compiler_params=pltpu.CompilerParams(
            dimension_semantics=("parallel", "parallel"),
            vmem_limit_bytes=vmem_limit,
        ),
        cost_estimate=pl.CostEstimate(
            flops=flops, transcendentals=0, bytes_accessed=bytes_accessed
        ),
    )(x, wm)
    return out.reshape(n, cout, ho, wo)


def _conv1x1_dense(x, wm):
    """Stride-1 GEMM path (also the fallback target after a subsample)."""
    n, cin, h, w = x.shape
    cout = wm.shape[0]
    l = h * w
    itemsize = jnp.dtype(x.dtype).itemsize
    budget, vmem_limit = _vmem_budgets()
    tl = _pick_lane_tile(l, cin, cout, itemsize, budget)

    xm = x.reshape(n, cin, l)  # free bitcast: NCHW is already (C, H*W)-major
    flops = 2 * n * cout * cin * l
    bytes_accessed = itemsize * (n * cin * l + cout * cin + n * cout * l)

    out = pl.pallas_call(
        _dense_kernel,
        out_shape=jax.ShapeDtypeStruct((n, cout, l), x.dtype),
        grid=(n, pl.cdiv(l, tl)),
        in_specs=[
            pl.BlockSpec((None, cin, tl), lambda b, j: (b, 0, j)),
            pl.BlockSpec((cout, cin), lambda b, j: (0, 0)),
        ],
        out_specs=pl.BlockSpec((None, cout, tl), lambda b, j: (b, 0, j)),
        compiler_params=pltpu.CompilerParams(
            dimension_semantics=("parallel", "parallel"),
            vmem_limit_bytes=vmem_limit,
            # Let XLA fuse any producer (e.g. the fallback strided subsample)
            # into the pallas input instead of materializing it in HBM.
            allow_input_fusion=[True, False],
        ),
        cost_estimate=pl.CostEstimate(
            flops=flops, transcendentals=0, bytes_accessed=bytes_accessed
        ),
    )(xm, wm)
    return out.reshape(n, cout, h, w)


_STRIDED_PATH_OK = True  # flipped off if Mosaic rejects the fused-stride kernel


def shortcut_forward(x, weight, in_plane, out_plane):
    """Forward pass of ShortCut (NCHW, matching the PyTorch module).

    x:      (N, Cin, H, W)
    weight: (Cout, Cin, 1, 1) PyTorch Conv2d layout (ignored on identity path)
    """
    global _STRIDED_PATH_OK
    if in_plane == out_plane:
        return x  # identity path

    stride = max(out_plane // in_plane, 1)
    n, c, h, w = x.shape
    assert c == in_plane
    # Match dtypes up-front (tiny cast) so the MXU sees no implicit promotion.
    wm = weight.reshape(out_plane, in_plane).astype(x.dtype)

    if _STRIDED_PATH_OK and stride > 1 and h % stride == 0 and w % stride == 0:
        try:
            return _conv1x1_strided(x, wm, stride)
        except Exception:
            # Defensive: if this Mosaic version rejects the in-kernel lane
            # relayout, fall back to the materialized subsample + dense GEMM.
            _STRIDED_PATH_OK = False

    if stride > 1:
        # TODO(synk): fold this residual gather into the kernel as well (only
        # reached for non-divisible H/W or when the fused path is unavailable).
        x = x[:, :, ::stride, ::stride]
    return _conv1x1_dense(x, wm)


def init_shortcut_weight(key, in_plane, out_plane):
    """Deterministic init matching `initweights` for a 1x1 Conv2d."""
    fan = 1 * 1 * out_plane
    std = math.sqrt(2.0 / fan)
    return std * jax.random.normal(
        key, (out_plane, in_plane, 1, 1), dtype=jnp.float32
    )


if __name__ == "__main__":
    key = jax.random.PRNGKey(0)
    k_x, k_w, k_x2, k_w2 = jax.random.split(key, 4)

    # Conv path: in_plane != out_plane -> 1x1 conv with stride out/in = 2.
    in_plane, out_plane = 4, 8
    x = jax.random.normal(k_x, (2, in_plane, 16, 16), dtype=jnp.float32)
    weight = init_shortcut_weight(k_w, in_plane, out_plane)

    out = jax.block_until_ready(shortcut_forward(x, weight, in_plane, out_plane))
    ref = jnp.einsum(
        "nchw,oc->nohw", x[:, :, ::2, ::2], weight.reshape(out_plane, in_plane)
    )
    assert out.shape == (2, out_plane, 8, 8)
    assert jnp.allclose(out, ref, atol=1e-5, rtol=1e-5)

    # Smoke-test the dense (stride-1 / fallback) kernel path too.
    x2 = jax.random.normal(k_x2, (2, 4, 8, 8), dtype=jnp.float32)
    w2 = 0.1 * jax.random.normal(k_w2, (6, 4), dtype=jnp.float32)
    out2 = jax.block_until_ready(_conv1x1_dense(x2, w2))
    ref2 = jnp.einsum("nchw,oc->nohw", x2, w2)
    assert jnp.allclose(out2, ref2, atol=1e-5, rtol=1e-5)

    # Identity path: in_plane == out_plane returns x unchanged.
    x_id = jax.random.normal(k_x, (2, 4, 16, 16), dtype=jnp.float32)
    out_id = jax.block_until_ready(shortcut_forward(x_id, None, 4, 4))
    assert jnp.array_equal(out_id, x_id)

    print("KERNEL_OK")
</pallas_src>

<mosaic_0001>
module attributes {stable_mosaic.version = 11 : i64} {
  func.func @kernel(%arg0: i32, %arg1: i32, %arg2: memref<1x4x16x16xf32, #tpu.memory_space<vmem>>, %arg3: memref<8x4xf32, #tpu.memory_space<vmem>>, %arg4: memref<1x8x64xf32, #tpu.memory_space<vmem>>) attributes {dimension_semantics = [#tpu.dimension_semantics<parallel>, #tpu.dimension_semantics<parallel>], iteration_bounds = array<i64: 2, 1>, scalar_prefetch = 0 : i64, scratch_operands = 0 : i64, tpu.core_type = #tpu.core_type<tc>, window_params = [{transform_indices = @transform_0, window_bounds = array<i64: 1, 4, 16, 16>}, {pipeline_mode = #tpu.pipeline_mode<synchronous>, transform_indices = @transform_1, window_bounds = array<i64: 8, 4>}, {transform_indices = @transform_2, window_bounds = array<i64: 1, 8, 64>}]} {
    %c0 = arith.constant 0 : index
    %c0_0 = arith.constant 0 : index
    %c0_1 = arith.constant 0 : index
    %c0_2 = arith.constant 0 : index
    %0 = vector.load %arg2[%c0, %c0_0, %c0_1, %c0_2] : memref<1x4x16x16xf32, #tpu.memory_space<vmem>>, vector<1x4x16x16xf32>
    %1 = vector.shape_cast %0 : vector<1x4x16x16xf32> to vector<4x16x16xf32>
    %2 = vector.shape_cast %1 : vector<4x16x16xf32> to vector<4x8x2x16xf32>
    %3 = vector.extract_strided_slice %2 {offsets = [0, 0, 0, 0], sizes = [4, 8, 1, 16], strides = [1, 1, 1, 1]} : vector<4x8x2x16xf32> to vector<4x8x1x16xf32>
    %4 = vector.shape_cast %3 : vector<4x8x1x16xf32> to vector<4x8x16xf32>
    %5 = vector.shape_cast %4 : vector<4x8x16xf32> to vector<4x8x8x2xf32>
    %6 = vector.extract_strided_slice %5 {offsets = [0, 0, 0, 0], sizes = [4, 8, 8, 1], strides = [1, 1, 1, 1]} : vector<4x8x8x2xf32> to vector<4x8x8x1xf32>
    %7 = vector.shape_cast %6 : vector<4x8x8x1xf32> to vector<4x8x8xf32>
    %8 = vector.shape_cast %7 : vector<4x8x8xf32> to vector<4x64xf32>
    %c0_3 = arith.constant 0 : index
    %c0_4 = arith.constant 0 : index
    %9 = vector.load %arg3[%c0_3, %c0_4] : memref<8x4xf32, #tpu.memory_space<vmem>>, vector<8x4xf32>
    %cst = arith.constant dense<0.000000e+00> : vector<8x64xf32>
    %10 = tpu.matmul %9, %8, %cst {dimension_numbers = #tpu.dot_dimension_numbers<[1], [0], [0], [1], [0, 0, 1, 1], [], []>} : vector<8x4xf32>, vector<4x64xf32>, vector<8x64xf32> -> vector<8x64xf32>
    %c0_5 = arith.constant 0 : index
    %c0_6 = arith.constant 0 : index
    %c0_7 = arith.constant 0 : index
    %11 = vector.load %arg4[%c0_5, %c0_6, %c0_7] : memref<1x8x64xf32, #tpu.memory_space<vmem>>, vector<1x8x64xf32>
    %12 = vector.shape_cast %11 : vector<1x8x64xf32> to vector<8x64xf32>
    %13 = vector.shape_cast %10 : vector<8x64xf32> to vector<1x8x64xf32>
    tpu.vector_store %arg4[%c0_5, %c0_6, %c0_7], %13 {strides = array<i32>} : memref<1x8x64xf32, #tpu.memory_space<vmem>>, vector<1x8x64xf32>,
    return
  }
  func.func @transform_0(%arg0: i32, %arg1: i32) -> (i32, i32, i32, i32) {
    %c0_i32 = arith.constant 0 : i32
    %c0_i32_0 = arith.constant 0 : i32
    %c0_i32_1 = arith.constant 0 : i32
    return %arg0, %c0_i32, %arg1, %c0_i32_0 : i32, i32, i32, i32
  }
  func.func @transform_1(%arg0: i32, %arg1: i32) -> (i32, i32) {
    %c0_i32 = arith.constant 0 : i32
    %c0_i32_0 = arith.constant 0 : i32
    %c0_i32_1 = arith.constant 0 : i32
    return %c0_i32, %c0_i32_0 : i32, i32
  }
  func.func @transform_2(%arg0: i32, %arg1: i32) -> (i32, i32, i32) {
    %c0_i32 = arith.constant 0 : i32
    %c0_i32_0 = arith.constant 0 : i32
    return %arg0, %c0_i32, %arg1 : i32, i32, i32
  }
}

module attributes {stable_mosaic.version = 11 : i64} {
  func.func @_dense_kernel(%arg0: i32, %arg1: i32, %arg2: memref<1x4x64xf32, #tpu.memory_space<vmem>>, %arg3: memref<8x4xf32, #tpu.memory_space<vmem>>, %arg4: memref<1x8x64xf32, #tpu.memory_space<vmem>>) attributes {dimension_semantics = [#tpu.dimension_semantics<parallel>, #tpu.dimension_semantics<parallel>], iteration_bounds = array<i64: 2, 1>, scalar_prefetch = 0 : i64, scratch_operands = 0 : i64, tpu.core_type = #tpu.core_type<tc>, window_params = [{transform_indices = @transform_0, window_bounds = array<i64: 1, 4, 64>}, {pipeline_mode = #tpu.pipeline_mode<synchronous>, transform_indices = @transform_1, window_bounds = array<i64: 8, 4>}, {transform_indices = @transform_2, window_bounds = array<i64: 1, 8, 64>}]} {
    %c0 = arith.constant 0 : index
    %c0_0 = arith.constant 0 : index
    %0 = vector.load %arg3[%c0, %c0_0] : memref<8x4xf32, #tpu.memory_space<vmem>>, vector<8x4xf32>
    %c0_1 = arith.constant 0 : index
    %c0_2 = arith.constant 0 : index
    %c0_3 = arith.constant 0 : index
    %1 = vector.load %arg2[%c0_1, %c0_2, %c0_3] : memref<1x4x64xf32, #tpu.memory_space<vmem>>, vector<1x4x64xf32>
    %2 = vector.shape_cast %1 : vector<1x4x64xf32> to vector<4x64xf32>
    %cst = arith.constant dense<0.000000e+00> : vector<8x64xf32>
    %3 = tpu.matmul %0, %2, %cst {dimension_numbers = #tpu.dot_dimension_numbers<[1], [0], [0], [1], [0, 0, 1, 1], [], []>} : vector<8x4xf32>, vector<4x64xf32>, vector<8x64xf32> -> vector<8x64xf32>
    %c0_4 = arith.constant 0 : index
    %c0_5 = arith.constant 0 : index
    %c0_6 = arith.constant 0 : index
    %4 = vector.load %arg4[%c0_4, %c0_5, %c0_6] : memref<1x8x64xf32, #tpu.memory_space<vmem>>, vector<1x8x64xf32>
    %5 = vector.shape_cast %4 : vector<1x8x64xf32> to vector<8x64xf32>
    %6 = vector.shape_cast %3 : vector<8x64xf32> to vector<1x8x64xf32>
    tpu.vector_store %arg4[%c0_4, %c0_5, %c0_6], %6 {strides = array<i32>} : memref<1x8x64xf32, #tpu.memory_space<vmem>>, vector<1x8x64xf32>,
    return
  }
  func.func @transform_0(%arg0: i32, %arg1: i32) -> (i32, i32, i32) {
    %c0_i32 = arith.constant 0 : i32
    %c0_i32_0 = arith.constant 0 : i32
    return %arg0, %c0_i32, %arg1 : i32, i32, i32
  }
  func.func @transform_1(%arg0: i32, %arg1: i32) -> (i32, i32) {
    %c0_i32 = arith.constant 0 : i32
    %c0_i32_0 = arith.constant 0 : i32
    %c0_i32_1 = arith.constant 0 : i32
    return %c0_i32, %c0_i32_0 : i32, i32
  }
  func.func @transform_2(%arg0: i32, %arg1: i32) -> (i32, i32, i32) {
    %c0_i32 = arith.constant 0 : i32
    %c0_i32_0 = arith.constant 0 : i32
    return %arg0, %c0_i32, %arg1 : i32, i32, i32
  }
}

</mosaic_0001>

<bundles_post_ra>
// kernel: tpu_custom_call.1
= control target key start
LH: loop header
LB: loop body
LE: loop exit
PB: predicated region body
PF: predicated region fallthrough
CT: control target
= control target key end

     0   :  { %7 = vsyncpa [#allocation3], 0  ;;  %s5129_s0 = inlined_call_operand.hbm [shape: f32[2,4,16,16], index: 0, kind: input, shape index: {}]   ;;  %s5130_s1 = inlined_call_operand.vmem [shape: f32[8,4], index: 1, kind: input, shape index: {}]   ;;  %s5131_s2 = inlined_call_operand.hbm [shape: f32[2,8,64], index: 2, kind: output, shape index: {}]  }
   0x1   :  { %9 = vsyncpa [#allocation3 + $0x1], 0 }
   0x2   :  { %10 = vsyncpa [#allocation4], 0 }
   0x3   :  { %12 = vsyncpa [#allocation4 + $0x1], 0  ;;  %s3435_s9 = smov 0   ;;  %s3437_s10 = smov 0  }
   0x4   :  { %s3439_s11 = smov 0   ;;  %s3441_s12 = smov 0  }
   0x5   :  { %s3443_s13 = smov 0   ;;  %s3445_s14 = smov 0  }
   0x6 LB: > { %s3184_s15 = sadd.s32 4294967295, %s3402_s14   ;;  %s3185_s16 = sadd.s32 4294967294, %s3402_s14   ;;  %s3402_s14 = sphi %s3445_s14, %s18_s14   ;;  %s3398_s13 = sphi %s3443_s13, %s5437_s13   ;;  %s3394_s12 = sphi %s3441_s12, %s5436_s12   ;;  %s3390_s11 = sphi %s3439_s11, %s5435_s11   ;;  %s3386_s10 = sphi %s3437_s10, %s5434_s10   ;;  %s3382_s9 = sphi %s3435_s9, %s5433_s9  }
   0x7   : > { %s30_s17 = sadd.s32 1, %s3398_s13  ;;  %s39_s18 = sadd.s32 1, %s3390_s11 }
   0x8   : > { %p32_p0 = scmp.ge.s32.totalorder %s30_s17, 2  ;;  %p46_p1 = scmp.ne.s32.totalorder %s3390_s11, %s3386_s10 }
   0x9   : > { %p47_p2 = scmp.eq.s32.totalorder %s3402_s14, 0  ;;  %p52_p3 = scmp.ne.s32.totalorder %s3386_s10, %s3382_s9 }
   0xa   : > { %s5439_s17 = smov (%p32_p0, %s30_s17), 0  ;;  %p53_p5 = scmp.eq.s32.totalorder %s3184_s15, 0 }
   0xb   : > { %p3476_p4 = por %p47_p2, %p46_p1  ;;  %s34_s20 = ssub.s32 %s3398_s13, %s5439_s17 }
   0xc   : > { %p99_p6 = scmp.eq.s32.totalorder %s3184_s15, 1  ;;  %p37_p7 = scmp.eq.s32.totalorder %s34_s20, 0 }
   0xd   : > { %p3482_p8 = por %p53_p5, %p52_p3  ;;  %p105_p10 = scmp.eq.s32.totalorder %s3185_s16, 1 }
   0xe   : > { %p3486_p9 = por %p99_p6, %p46_p1  ;;  %p3220_p13 = scmp.lt.s32.totalorder %s3402_s14, 2 }
   0xf   : > { %s3491_s23 = scalar_select %p37_p7, %s3390_s11, %s39_s18  }
  0x10   : > { %p3493_p11 = por %p105_p10, %p52_p3  ;;  %s128_s25 = sand.u32 1, %s3390_s11  }
  0x11   : > { %s3188_s26 = sshll.u32 %s128_s25, 6  ;;  %s3200_s27 = sshll.u32 %s3398_s13, 10 }
  0x12   : > { %s140_s30 = scalar_lea.hbm %s5129_s0, %s3200_s27  ;;  %s132_s3 = scalar_lea.vmem [#allocation2], %s3188_s26 }
  0x13   : > { %s141_s4 = sshll.u32 %s132_s3, 4  ;;  %p3506_p0 = pnand %p3220_p13, %p3476_p4  ;;  %s142_s4 = int_to_ptr.vmem [resolvable:$true] %s141_s4 }
  0x14   : > { %p3191_p1 = scmp.ge.s32.totalorder %s3402_s14, 1  ;;  %s129_s6 = scalar_lea.sflag [#allocation3], %s128_s25 }
  0x15   : > { %p3296_p2 = pneg %p3506_p0  ;;  %s3307_s7 = scalar_lea.vmem %s142_s4, 1024 }
  0x16   : > { %p3308_p3 = scmp.ne.s32.totalorder %s142_s4, %s3307_s7  ;;  %s3404_s8 = smov [#allocation2]  }
  0x17   : > { %s3312_s15 = sshll.u32 %s3404_s8, 4  ;;  %s3313_s15 = int_to_ptr.vmem [resolvable:$false] %s3312_s15 }
  0x18   : > { %p3310_p5 = pnand %p3308_p3, %p3296_p2  ;;  %s3314_s16 = scalar_lea.vmem %s3313_s15, 2048 }
  0x19   : > { %p3315_p7 = scmp.lt.s32.totalorder %s142_s4, %s3313_s15  ;;  %p3316_p10 = scmp.lt.s32.totalorder %s3314_s16, %s3307_s7 }
  0x1a   : > { %p3311_p6 = pneg %p3310_p5 }
  0x1b   : > { %p3317_p12 = por %p3316_p10, %p3315_p7 }
  0x1d   : > { %p3318_p4 = pnand %p3317_p12, %p3311_p6 }
  0x1f   : > { %3321 = shalt.err (!%p3318_p4)
}
  0x20   : > { %s3405_s18 = smov 128   ;;  %s3406_s19 = smov 8  }
  0x21   : > { %3215 = dma.hbm_to_vmem [thread:$0]  (!%p3506_p0), %s140_s30, 1024, %s142_s4, %s129_s6, %s3405_s18, %s3405_s18, %s3406_s19  }
  0x22   : > { %p149_p13 = scmp.lt.s32.totalorder %s3402_s14, 3 }
  0x24   : > { %p150_p2 = pnand %p3191_p1, %p149_p13 }
  0x26   : > { %153 = sbr.rel (%p150_p2) target bundleno = 961 (0x3c1), region = 28 }
  0x2b   : > { %s3519_s20 = sand.u32 1, %s3386_s10  }
  0x2c   : > { %s3192_s25 = sshll.u32 %s3519_s20, 6  ;;  %s156_s26 = scalar_lea.sflag [#allocation3], %s3519_s20 }
  0x2d   : > { %s3523_s27 = scalar_lea.vmem [#allocation2], %s3192_s25 }
  0x2e   : > { %3373 = dma.done.wait (%p3482_p8), %s156_s26, 1024  }
  0x2f   : > { %3375 = vsyncadd (%p3482_p8), %s156_s26, 4294966272  ;;  %v5132_v0 = vlaneseq  ;;  %v3407_v1 = vmov 1983009808   ;;  %v181_v6 = vld [vmem:[%s3523_s27] sm:$0xff]  ;;  %v182_v7 = vld [vmem:[%s3523_s27 + $0x8] sm:$0xff]  ;;  %s3408_s21 = smov 126  }
  0x30   : > { %v199_v2 = vunpack.c.l.s4 %v3407_v1  ;;  %v197_v9 = vcombine.high %v181_v6, %v181_v6  ;;  %v214_v13 = vcombine.high %v182_v7, %v182_v7  ;;  %v183_v17 = vld [vmem:[%s3523_s27 + $0x10] sm:$0xff]  ;;  %v184_v23 = vld [vmem:[%s3523_s27 + $0x18] sm:$0xff]  ;;  %v185_v29 = vld [vmem:[%s3523_s27 + $0x20] sm:$0xff]  ;;  %s3409_s28 = smov 124   ;;  %s3410_s29 = smov 122   ;;  %vm3418_vm0 = vmmov 0  }
  0x31   : > { %v3530_v3 = vshrl.u32 %v5132_v0, 7  ;;  %v231_v20 = vcombine.high %v183_v17, %v183_v17  ;;  %v248_v26 = vcombine.high %v184_v23, %v184_v23  ;;  %v265_v32 = vcombine.high %v185_v29, %v185_v29  ;;  %v186_v35 = vld [vmem:[%s3523_s27 + $0x28] sm:$0xff]  ;;  %v187_v41 = vld [vmem:[%s3523_s27 + $0x30] sm:$0xff]  ;;  %v188_v47 = vld [vmem:[%s3523_s27 + $0x38] sm:$0xff]  ;;  %s3411_s30 = smov 120   ;;  %s3412_s3 = smov 118  }
  0x32   : > { %v200_v4 = vunpack.c.0.s8 %v199_v2  ;;  %v282_v38 = vcombine.high %v186_v35, %v186_v35  ;;  %v299_v44 = vcombine.high %v187_v41, %v187_v41  ;;  %v316_v50 = vcombine.high %v188_v47, %v188_v47  ;;  %s3413_s4 = smov 116   ;;  %s3414_s5 = smov 114  }
  0x33   : > { %5161 = vst [vmem:[#allocation8_spill] sm:$0xff] %v3530_v3  ;;  %vm2841_vm1 = vcmask 130112   ;;  %vm2848_vm2 = vcmask 195712   ;;  %vm2855_vm3 = vcmask 261312   ;;  %vm2862_vm4 = vcmask 326912   ;;  %s3193_s8 = sshll.u32 %s3519_s20, 3 }
  0x34   : > { %v3533_v5 = vsub.s32 %v200_v4, %v3530_v3  ;;  %vm2869_vm5 = vcmask 392512   ;;  %vm2876_vm6 = vcmask 458112   ;;  %vm2883_vm7 = vcmask 523712   ;;  %s3197_s15 = sshll.u32 %s3394_s12, 7  ;;  %s179_s16 = scalar_lea.vmem [#allocation5], %s3193_s8 }
  0x35   : > { %vm3002_vm8 = vcmask 1041409   ;;  %vm3004_vm9 = vcmask 1042434   ;;  %vm3006_vm10 = vcmask 1043459   ;;  %vm3012_vm11 = vcmask 1043456   ;;  %s3102_s18 = sshll.u32 %s179_s16, 4  ;;  %s5081_s26 = scalar_lea.hbm %s5131_s2, %s3197_s15  ;;  %s5083_s18 = int_to_ptr.vmem [resolvable:$true] %s3102_s18 }
  0x36   : > { %5162 = vst [vmem:[#allocation9_spill] sm:$0xff] %v3533_v5  ;;  %v3538_v8 = vrot.slane %v181_v6, %v3533_v5  ;;  %v3541_v10 = vrot.slane %v182_v7, %v3533_v5  ;;  %v3546_v11 = vrot.slane %v197_v9, %v3533_v5  ;;  %v3567_v16 = vrot.slane %v214_v13, %v3533_v5  ;;  %s3088_s27 = scalar_lea.sflag [#allocation4], %s3519_s20  ;;  %s3419_s12 = smov [#allocation5]  }
  0x37   : > { %v3579_v19 = vrot.slane %v183_v17, %v3533_v5  ;;  %v3590_v22 = vrot.slane %v231_v20, %v3533_v5  ;;  %v3602_v25 = vrot.slane %v184_v23, %v3533_v5  ;;  %v3613_v28 = vrot.slane %v248_v26, %v3533_v5 }
  0x38   : > { %365 = vrot.lane.b32.xlu0 %v3538_v8, %s3408_s21  ;;  %369 = vrot.lane.b32.xlu1 %v3546_v11, %s3408_s21  ;;  %v3552_v12 = vcombine.high %v3541_v10, %v3541_v10  ;;  %v3558_v14 = vcombine.high %v3538_v8, %v3538_v8  ;;  %v3564_v15 = vcombine.high %v3546_v11, %v3546_v11  ;;  %vm3008_vm12 = vcmask 31744  }
  0x39   : > { %5164 = vst [vmem:[#allocation11_spill] sm:$0xff] %v3567_v16  ;;  %v3576_v18 = vcombine.high %v3567_v16, %v3567_v16  ;;  %v3587_v21 = vcombine.high %v3579_v19, %v3579_v19  ;;  %v3599_v24 = vcombine.high %v3590_v22, %v3590_v22  ;;  %v3610_v27 = vcombine.high %v3602_v25, %v3602_v25 }
  0x3a   : > { %5163 = vst [vmem:[#allocation10_spill] sm:$0xff] %v3552_v12  ;;  %5166 = vst [vmem:[#allocation13_spill] sm:$0xff] %v3613_v28  ;;  %v3622_v30 = vcombine.high %v3613_v28, %v3613_v28  ;;  %v3625_v31 = vrot.slane %v185_v29, %v3533_v5  ;;  %v3636_v34 = vrot.slane %v265_v32, %v3533_v5  ;;  %vm3085_vm13 = vcmask 523264  }
  0x3b   : > { %5165 = vst [vmem:[#allocation12_spill] sm:$0xff] %v3610_v27  ;;  %v3648_v37 = vrot.slane %v186_v35, %v3533_v5  ;;  %v3659_v40 = vrot.slane %v282_v38, %v3533_v5  ;;  %v3671_v43 = vrot.slane %v187_v41, %v3533_v5  ;;  %v3682_v46 = vrot.slane %v299_v44, %v3533_v5 }
  0x3c   : > { %373 = vrot.lane.b32.xlu0 %v3541_v10, %s3408_s21  ;;  %375 = vrot.lane.b32.xlu1 %v3552_v12, %s3408_s21  ;;  %5167 = vst [vmem:[#allocation14_spill] sm:$0xff] %v3622_v30  ;;  %v3633_v33 = vcombine.high %v3625_v31, %v3625_v31  ;;  %v3645_v36 = vcombine.high %v3636_v34, %v3636_v34 }
  0x3d   : > { %5168 = vst [vmem:[#allocation15_spill] sm:$0xff] %v3648_v37  ;;  %v3656_v39 = vcombine.high %v3648_v37, %v3648_v37  ;;  %5170 = vst [vmem:[#allocation17_spill] sm:$0xff] %v3659_v40  ;;  %v3668_v42 = vcombine.high %v3659_v40, %v3659_v40  ;;  %v3679_v45 = vcombine.high %v3671_v43, %v3671_v43 }
  0x3e   : > { %5172 = vst [vmem:[#allocation19_spill] sm:$0xff] %v3682_v46  ;;  %v3691_v48 = vcombine.high %v3682_v46, %v3682_v46  ;;  %v3694_v49 = vrot.slane %v188_v47, %v3533_v5  ;;  %v3705_v52 = vrot.slane %v316_v50, %v3533_v5 }
  0x3f   : > { %5169 = vst [vmem:[#allocation16_spill] sm:$0xff] %v3656_v39  ;;  %5171 = vst [vmem:[#allocation18_spill] sm:$0xff] %v3668_v42 }
  0x40   : > { %367 = vrot.lane.b32.xlu0 %v3558_v14, %s3408_s21  ;;  %371 = vrot.lane.b32.xlu1 %v3564_v15, %s3408_s21  ;;  %5173 = vst [vmem:[#allocation20_spill] sm:$0xff] %v3691_v48  ;;  %5174 = vst [vmem:[#allocation21_spill] sm:$0xff] %v3694_v49  ;;  %v3702_v51 = vcombine.high %v3694_v49, %v3694_v49  ;;  %v3713_v53 = vcombine.high %v3705_v52, %v3705_v52 }
  0x41   : > { %5176 = vst [vmem:[#allocation23_spill] sm:$0xff] %v3705_v52 }
  0x42   : > { %5175 = vst [vmem:[#allocation22_spill] sm:$0xff] %v3702_v51  ;;  %5177 = vst [vmem:[#allocation24_spill] sm:$0xff] %v3713_v53 }
  0x44   : > { %377 = vrot.lane.b32.xlu0 %v3567_v16, %s3408_s21  ;;  %379 = vrot.lane.b32.xlu1 %v3576_v18, %s3408_s21 }
  0x48   : > { %381 = vrot.lane.b32.xlu0 %v3579_v19, %s3408_s21  ;;  %383 = vrot.lane.b32.xlu1 %v3587_v21, %s3408_s21 }
  0x4c   : > { %385 = vrot.lane.b32.xlu0 %v3590_v22, %s3408_s21  ;;  %387 = vrot.lane.b32.xlu1 %v3599_v24, %s3408_s21 }
  0x50   : > { %389 = vrot.lane.b32.xlu0 %v3602_v25, %s3408_s21  ;;  %391 = vrot.lane.b32.xlu1 %v3610_v27, %s3408_s21 }
  0x54   : > { %393 = vrot.lane.b32.xlu0 %v3613_v28, %s3408_s21  ;;  %395 = vrot.lane.b32.xlu1 %v3622_v30, %s3408_s21 }
  0x58   : > { %397 = vrot.lane.b32.xlu0 %v3625_v31, %s3408_s21  ;;  %399 = vrot.lane.b32.xlu1 %v3633_v33, %s3408_s21 }
  0x5c   : > { %401 = vrot.lane.b32.xlu0 %v3636_v34, %s3408_s21  ;;  %403 = vrot.lane.b32.xlu1 %v3645_v36, %s3408_s21 }
  0x60   : > { %405 = vrot.lane.b32.xlu0 %v3648_v37, %s3408_s21  ;;  %407 = vrot.lane.b32.xlu1 %v3656_v39, %s3408_s21 }
  0x64   : > { %409 = vrot.lane.b32.xlu0 %v3659_v40, %s3408_s21  ;;  %411 = vrot.lane.b32.xlu1 %v3668_v42, %s3408_s21 }
  0x68   : > { %413 = vrot.lane.b32.xlu0 %v3671_v43, %s3408_s21  ;;  %415 = vrot.lane.b32.xlu1 %v3679_v45, %s3408_s21 }
  0x6c   : > { %417 = vrot.lane.b32.xlu0 %v3682_v46, %s3408_s21  ;;  %419 = vrot.lane.b32.xlu1 %v3691_v48, %s3408_s21 }
  0x70   : > { %421 = vrot.lane.b32.xlu0 %v3694_v49, %s3408_s21  ;;  %423 = vrot.lane.b32.xlu1 %v3702_v51, %s3408_s21 }
  0x74   : > { %425 = vrot.lane.b32.xlu0 %v3705_v52, %s3408_s21  ;;  %427 = vrot.lane.b32.xlu1 %v3713_v53, %s3408_s21  ;;  %s3322_s21 = scalar_lea.vmem %s5083_s18, 128 }
  0x75   : > { %p3323_p8 = scmp.ne.s32.totalorder %s5083_s18, %s3322_s21 }
  0x77   : > { %p3324_p12 = pnand %p3323_p8, %p3486_p9 }
  0x78   : > { %461 = vrot.lane.b32.xlu0 %v3538_v8, %s3409_s28  ;;  %463 = vrot.lane.b32.xlu1 %v3558_v14, %s3409_s28 }
  0x79   : > { %p3325_p0 = pneg %p3324_p12 }
  0x7c   : > { %465 = vrot.lane.b32.xlu0 %v3546_v11, %s3409_s28  ;;  %467 = vrot.lane.b32.xlu1 %v3564_v15, %s3409_s28 }
  0x80   : > { %469 = vrot.lane.b32.xlu0 %v3541_v10, %s3409_s28  ;;  %471 = vrot.lane.b32.xlu1 %v3552_v12, %s3409_s28 }
  0x84   : > { %473 = vrot.lane.b32.xlu0 %v3567_v16, %s3409_s28  ;;  %475 = vrot.lane.b32.xlu1 %v3576_v18, %s3409_s28 }
  0x88   : > { %477 = vrot.lane.b32.xlu0 %v3579_v19, %s3409_s28  ;;  %479 = vrot.lane.b32.xlu1 %v3587_v21, %s3409_s28 }
  0x8c   : > { %481 = vrot.lane.b32.xlu0 %v3590_v22, %s3409_s28  ;;  %483 = vrot.lane.b32.xlu1 %v3599_v24, %s3409_s28 }
  0x90   : > { %485 = vrot.lane.b32.xlu0 %v3602_v25, %s3409_s28  ;;  %487 = vrot.lane.b32.xlu1 %v3610_v27, %s3409_s28 }
  0x94   : > { %489 = vrot.lane.b32.xlu0 %v3613_v28, %s3409_s28  ;;  %491 = vrot.lane.b32.xlu1 %v3622_v30, %s3409_s28 }
  0x98   : > { %493 = vrot.lane.b32.xlu0 %v3625_v31, %s3409_s28  ;;  %495 = vrot.lane.b32.xlu1 %v3633_v33, %s3409_s28 }
  0x9c   : > { %497 = vrot.lane.b32.xlu0 %v3636_v34, %s3409_s28  ;;  %499 = vrot.lane.b32.xlu1 %v3645_v36, %s3409_s28 }
  0xa0   : > { %501 = vrot.lane.b32.xlu0 %v3648_v37, %s3409_s28  ;;  %503 = vrot.lane.b32.xlu1 %v3656_v39, %s3409_s28 }
  0xa4   : > { %505 = vrot.lane.b32.xlu0 %v3659_v40, %s3409_s28  ;;  %507 = vrot.lane.b32.xlu1 %v3668_v42, %s3409_s28 }
  0xa8   : > { %509 = vrot.lane.b32.xlu0 %v3671_v43, %s3409_s28  ;;  %511 = vrot.lane.b32.xlu1 %v3679_v45, %s3409_s28 }
  0xaa   : > { %v3769_v54 = vpop.permute.xlu0 %365  ;;  %v3775_v55 = vpop.permute.xlu1 %369 }
  0xac   : > { %513 = vrot.lane.b32.xlu0 %v3682_v46, %s3409_s28  ;;  %515 = vrot.lane.b32.xlu1 %v3691_v48, %s3409_s28 }
  0xae   : > { %v3777_v56 = vpop.permute.xlu0 %373  ;;  %v3783_v57 = vpop.permute.xlu1 %375 }
  0xaf   : > { %5178 = vst [vmem:[#allocation25_spill] sm:$0xff] %v3783_v57 }
  0xb0   : > { %517 = vrot.lane.b32.xlu0 %v3694_v49, %s3409_s28  ;;  %519 = vrot.lane.b32.xlu1 %v3702_v51, %s3409_s28 }
  0xb2   : > { %v3785_v58 = vpop.permute.xlu0 %367  ;;  %v3791_v59 = vpop.permute.xlu1 %371 }
  0xb4   : > { %521 = vrot.lane.b32.xlu0 %v3705_v52, %s3409_s28  ;;  %523 = vrot.lane.b32.xlu1 %v3713_v53, %s3409_s28  ;;  %s3326_s28 = sshll.u32 %s3419_s12, 4  ;;  %s3327_s28 = int_to_ptr.vmem [resolvable:$false] %s3326_s28 }
  0xb5   : > { %p3329_p1 = scmp.lt.s32.totalorder %s5083_s18, %s3327_s28 }
  0xb6   : > { %v3793_v60 = vpop.permute.xlu0 %377  ;;  %v3799_v61 = vpop.permute.xlu1 %379 }
  0xb7   : > { %5179 = vst [vmem:[#allocation26_spill] sm:$0xff] %v3793_v60  ;;  %5180 = vst [vmem:[#allocation27_spill] sm:$0xff] %v3799_v61 }
  0xb8   : > { %557 = vrot.lane.b32.xlu0 %v3538_v8, %s3410_s29  ;;  %559 = vrot.lane.b32.xlu1 %v3558_v14, %s3410_s29 }
  0xba   : > { %v3801_v62 = vpop.permute.xlu0 %381  ;;  %v3807_v63 = vpop.permute.xlu1 %383 }
  0xbc   : > { %561 = vrot.lane.b32.xlu0 %v3546_v11, %s3410_s29  ;;  %563 = vrot.lane.b32.xlu1 %v3564_v15, %s3410_s29 }
  0xbe   : > { %v3809_v1 = vpop.permute.xlu0 %385  ;;  %v3815_v2 = vpop.permute.xlu1 %387 }
  0xc0   : > { %565 = vrot.lane.b32.xlu0 %v3541_v10, %s3410_s29  ;;  %567 = vrot.lane.b32.xlu1 %v3552_v12, %s3410_s29 }
  0xc2   : > { %v3817_v4 = vpop.permute.xlu0 %389  ;;  %v3823_v6 = vpop.permute.xlu1 %391 }
  0xc3   : > { %5181 = vst [vmem:[#allocation28_spill] sm:$0xff] %v3823_v6 }
  0xc4   : > { %569 = vrot.lane.b32.xlu0 %v3567_v16, %s3410_s29  ;;  %571 = vrot.lane.b32.xlu1 %v3576_v18, %s3410_s29 }
  0xc6   : > { %v3825_v7 = vpop.permute.xlu0 %393  ;;  %v3831_v9 = vpop.permute.xlu1 %395 }
  0xc7   : > { %5182 = vst [vmem:[#allocation29_spill] sm:$0xff] %v3825_v7  ;;  %5183 = vst [vmem:[#allocation30_spill] sm:$0xff] %v3831_v9 }
  0xc8   : > { %573 = vrot.lane.b32.xlu0 %v3579_v19, %s3410_s29  ;;  %575 = vrot.lane.b32.xlu1 %v3587_v21, %s3410_s29 }
  0xca   : > { %v3833_v13 = vpop.permute.xlu0 %397  ;;  %v3839_v17 = vpop.permute.xlu1 %399 }
  0xcc   : > { %577 = vrot.lane.b32.xlu0 %v3590_v22, %s3410_s29  ;;  %579 = vrot.lane.b32.xlu1 %v3599_v24, %s3410_s29 }
  0xce   : > { %v3841_v20 = vpop.permute.xlu0 %401  ;;  %v3847_v23 = vpop.permute.xlu1 %403 }
  0xd0   : > { %581 = vrot.lane.b32.xlu0 %v3602_v25, %s3410_s29  ;;  %583 = vrot.lane.b32.xlu1 %v3610_v27, %s3410_s29 }
  0xd2   : > { %v3849_v26 = vpop.permute.xlu0 %405  ;;  %v3855_v29 = vpop.permute.xlu1 %407 }
  0xd3   : > { %5184 = vst [vmem:[#allocation31_spill] sm:$0xff] %v3849_v26  ;;  %5185 = vst [vmem:[#allocation32_spill] sm:$0xff] %v3855_v29 }
  0xd4   : > { %585 = vrot.lane.b32.xlu0 %v3613_v28, %s3410_s29  ;;  %587 = vrot.lane.b32.xlu1 %v3622_v30, %s3410_s29 }
  0xd6   : > { %v3857_v32 = vpop.permute.xlu0 %409  ;;  %v3863_v35 = vpop.permute.xlu1 %411 }
  0xd7   : > { %5186 = vst [vmem:[#allocation33_spill] sm:$0xff] %v3857_v32  ;;  %5187 = vst [vmem:[#allocation34_spill] sm:$0xff] %v3863_v35 }
  0xd8   : > { %589 = vrot.lane.b32.xlu0 %v3625_v31, %s3410_s29  ;;  %591 = vrot.lane.b32.xlu1 %v3633_v33, %s3410_s29 }
  0xda   : > { %v3865_v38 = vpop.permute.xlu0 %413  ;;  %v3871_v41 = vpop.permute.xlu1 %415 }
  0xdb   : > { %5188 = vst [vmem:[#allocation35_spill] sm:$0xff] %v3871_v41 }
  0xdc   : > { %593 = vrot.lane.b32.xlu0 %v3636_v34, %s3410_s29  ;;  %595 = vrot.lane.b32.xlu1 %v3645_v36, %s3410_s29 }
  0xde   : > { %v3873_v44 = vpop.permute.xlu0 %417  ;;  %v3879_v47 = vpop.permute.xlu1 %419 }
  0xdf   : > { %5189 = vst [vmem:[#allocation36_spill] sm:$0xff] %v3873_v44  ;;  %5190 = vst [vmem:[#allocation37_spill] sm:$0xff] %v3879_v47 }
  0xe0   : > { %597 = vrot.lane.b32.xlu0 %v3648_v37, %s3410_s29  ;;  %599 = vrot.lane.b32.xlu1 %v3656_v39, %s3410_s29 }
  0xe2   : > { %v3881_v50 = vpop.permute.xlu0 %421  ;;  %v3887_v0 = vpop.permute.xlu1 %423 }
  0xe3   : > { %5191 = vst [vmem:[#allocation38_spill] sm:$0xff] %v3881_v50  ;;  %5192 = vst [vmem:[#allocation39_spill] sm:$0xff] %v3887_v0 }
  0xe4   : > { %601 = vrot.lane.b32.xlu0 %v3659_v40, %s3410_s29  ;;  %603 = vrot.lane.b32.xlu1 %v3668_v42, %s3410_s29 }
  0xe6   : > { %v3889_v35 = vpop.permute.xlu0 %425  ;;  %v3895_v32 = vpop.permute.xlu1 %427 }
  0xe7   : > { %5193 = vst [vmem:[#allocation40_spill] sm:$0xff] %v3889_v35  ;;  %5194 = vst [vmem:[#allocation41_spill] sm:$0xff] %v3895_v32 }
  0xe8   : > { %605 = vrot.lane.b32.xlu0 %v3671_v43, %s3410_s29  ;;  %607 = vrot.lane.b32.xlu1 %v3679_v45, %s3410_s29 }
  0xea   : > { %v3897_v9 = vpop.permute.xlu0 %461  ;;  %v3903_v61 = vpop.permute.xlu1 %463 }
  0xec   : > { %609 = vrot.lane.b32.xlu0 %v3682_v46, %s3410_s29  ;;  %611 = vrot.lane.b32.xlu1 %v3691_v48, %s3410_s29 }
  0xee   : > { %v3905_v0 = vpop.permute.xlu0 %465  ;;  %v3911_v35 = vpop.permute.xlu1 %467 }
  0xf0   : > { %613 = vrot.lane.b32.xlu0 %v3694_v49, %s3410_s29  ;;  %615 = vrot.lane.b32.xlu1 %v3702_v51, %s3410_s29 }
  0xf2   : > { %v3913_v32 = vpop.permute.xlu0 %469  ;;  %v3919_v50 = vpop.permute.xlu1 %471 }
  0xf3   : > { %5195 = vst [vmem:[#allocation42_spill] sm:$0xff] %v3913_v32  ;;  %5196 = vst [vmem:[#allocation43_spill] sm:$0xff] %v3919_v50 }
  0xf4   : > { %617 = vrot.lane.b32.xlu0 %v3705_v52, %s3410_s29  ;;  %619 = vrot.lane.b32.xlu1 %v3713_v53, %s3410_s29  ;;  %s3328_s29 = scalar_lea.vmem %s3327_s28, 256 }
  0xf5   : > { %p3330_p3 = scmp.lt.s32.totalorder %s3328_s29, %s3322_s21 }
  0xf6   : > { %v3921_v29 = vpop.permute.xlu0 %473  ;;  %v3927_v7 = vpop.permute.xlu1 %475 }
  0xf7   : > { %5197 = vst [vmem:[#allocation44_spill] sm:$0xff] %v3921_v29  ;;  %5198 = vst [vmem:[#allocation45_spill] sm:$0xff] %v3927_v7  ;;  %p3331_p5 = por %p3330_p3, %p3329_p1 }
  0xf8   : > { %653 = vrot.lane.b32.xlu0 %v3538_v8, %s3411_s30  ;;  %655 = vrot.lane.b32.xlu1 %v3558_v14, %s3411_s30 }
  0xf9   : > { %p3332_p6 = pnand %p3331_p5, %p3325_p0 }
  0xfa   : > { %v3929_v60 = vpop.permute.xlu0 %477  ;;  %v3935_v47 = vpop.permute.xlu1 %479 }
  0xfc   : > { %657 = vrot.lane.b32.xlu0 %v3546_v11, %s3411_s30  ;;  %659 = vrot.lane.b32.xlu1 %v3564_v15, %s3411_s30 }
  0xfe   : > { %v3937_v29 = vpop.permute.xlu0 %481  ;;  %v3943_v26 = vpop.permute.xlu1 %483 }
  0xff   : > { %5199 = vst [vmem:[#allocation46_spill] sm:$0xff] %v3937_v29  ;;  %5200 = vst [vmem:[#allocation47_spill] sm:$0xff] %v3943_v26 }
 0x100   : > { %661 = vrot.lane.b32.xlu0 %v3541_v10, %s3411_s30  ;;  %663 = vrot.lane.b32.xlu1 %v3552_v12, %s3411_s30 }
 0x102   : > { %v3945_v7 = vpop.permute.xlu0 %485  ;;  %v3951_v6 = vpop.permute.xlu1 %487 }
 0x103   : > { %5201 = vst [vmem:[#allocation48_spill] sm:$0xff] %v3945_v7  ;;  %5202 = vst [vmem:[#allocation49_spill] sm:$0xff] %v3951_v6 }
 0x104   : > { %665 = vrot.lane.b32.xlu0 %v3567_v16, %s3411_s30  ;;  %667 = vrot.lane.b32.xlu1 %v3576_v18, %s3411_s30 }
 0x106   : > { %v3953_v57 = vpop.permute.xlu0 %489  ;;  %v3959_v50 = vpop.permute.xlu1 %491 }
 0x107   : > { %5203 = vst [vmem:[#allocation50_spill] sm:$0xff] %v3953_v57  ;;  %5204 = vst [vmem:[#allocation51_spill] sm:$0xff] %v3959_v50 }
 0x108   : > { %669 = vrot.lane.b32.xlu0 %v3579_v19, %s3411_s30  ;;  %671 = vrot.lane.b32.xlu1 %v3587_v21, %s3411_s30 }
 0x10a   : > { %v3961_v44 = vpop.permute.xlu0 %493  ;;  %v3967_v53 = vpop.permute.xlu1 %495 }
 0x10b   : > { %5205 = vst [vmem:[#allocation52_spill] sm:$0xff] %v3961_v44  ;;  %5206 = vst [vmem:[#allocation53_spill] sm:$0xff] %v3967_v53 }
 0x10c   : > { %673 = vrot.lane.b32.xlu0 %v3590_v22, %s3411_s30  ;;  %675 = vrot.lane.b32.xlu1 %v3599_v24, %s3411_s30 }
 0x10e   : > { %v3969_v6 = vpop.permute.xlu0 %497  ;;  %v3975_v57 = vpop.permute.xlu1 %499 }
 0x10f   : > { %5207 = vst [vmem:[#allocation54_spill] sm:$0xff] %v3969_v6  ;;  %5208 = vst [vmem:[#allocation55_spill] sm:$0xff] %v3975_v57 }
 0x110   : > { %677 = vrot.lane.b32.xlu0 %v3602_v25, %s3411_s30  ;;  %679 = vrot.lane.b32.xlu1 %v3610_v27, %s3411_s30 }
 0x112   : > { %v3977_v50 = vpop.permute.xlu0 %501  ;;  %v3983_v7 = vpop.permute.xlu1 %503 }
 0x113   : > { %5209 = vst [vmem:[#allocation56_spill] sm:$0xff] %v3977_v50  ;;  %5210 = vst [vmem:[#allocation57_spill] sm:$0xff] %v3983_v7 }
 0x114   : > { %681 = vrot.lane.b32.xlu0 %v3613_v28, %s3411_s30  ;;  %683 = vrot.lane.b32.xlu1 %v3622_v30, %s3411_s30 }
 0x116   : > { %v3985_v53 = vpop.permute.xlu0 %505  ;;  %v3991_v6 = vpop.permute.xlu1 %507 }
 0x117   : > { %5211 = vst [vmem:[#allocation58_spill] sm:$0xff] %v3985_v53  ;;  %5212 = vst [vmem:[#allocation59_spill] sm:$0xff] %v3991_v6 }
 0x118   : > { %685 = vrot.lane.b32.xlu0 %v3625_v31, %s3411_s30  ;;  %687 = vrot.lane.b32.xlu1 %v3633_v33, %s3411_s30 }
 0x11a   : > { %v3993_v57 = vpop.permute.xlu0 %509  ;;  %v3999_v50 = vpop.permute.xlu1 %511 }
 0x11b   : > { %5213 = vst [vmem:[#allocation60_spill] sm:$0xff] %v3993_v57  ;;  %5214 = vst [vmem:[#allocation61_spill] sm:$0xff] %v3999_v50 }
 0x11c   : > { %689 = vrot.lane.b32.xlu0 %v3636_v34, %s3411_s30  ;;  %691 = vrot.lane.b32.xlu1 %v3645_v36, %s3411_s30 }
 0x11e   : > { %v4001_v7 = vpop.permute.xlu0 %513  ;;  %v4007_v53 = vpop.permute.xlu1 %515 }
 0x11f   : > { %5215 = vst [vmem:[#allocation62_spill] sm:$0xff] %v4001_v7  ;;  %5216 = vst [vmem:[#allocation63_spill] sm:$0xff] %v4007_v53 }
 0x120   : > { %693 = vrot.lane.b32.xlu0 %v3648_v37, %s3411_s30  ;;  %695 = vrot.lane.b32.xlu1 %v3656_v39, %s3411_s30 }
 0x122   : > { %v4009_v6 = vpop.permute.xlu0 %517  ;;  %v4015_v57 = vpop.permute.xlu1 %519 }
 0x123   : > { %5217 = vst [vmem:[#allocation64_spill] sm:$0xff] %v4009_v6  ;;  %5218 = vst [vmem:[#allocation65_spill] sm:$0xff] %v4015_v57 }
 0x124   : > { %697 = vrot.lane.b32.xlu0 %v3659_v40, %s3411_s30  ;;  %749 = vrot.lane.b32.xlu1 %v3538_v8, %s3412_s3 }
 0x126   : > { %v4017_v50 = vpop.permute.xlu0 %521  ;;  %v4023_v53 = vpop.permute.xlu1 %523 }
 0x127   : > { %5219 = vst [vmem:[#allocation66_spill] sm:$0xff] %v4017_v50  ;;  %5220 = vst [vmem:[#allocation67_spill] sm:$0xff] %v4023_v53 }
 0x128   : > { %751 = vrot.lane.b32.xlu0 %v3558_v14, %s3412_s3  ;;  %765 = vrot.lane.b32.xlu1 %v3579_v19, %s3412_s3 }
 0x12a   : > { %v4025_v6 = vpop.permute.xlu0 %557  ;;  %v4031_v57 = vpop.permute.xlu1 %559 }
 0x12c   : > { %767 = vrot.lane.b32.xlu0 %v3587_v21, %s3412_s3  ;;  %845 = vrot.lane.b32.xlu1 %v3538_v8, %s3413_s4 }
 0x12e   : > { %v4033_v50 = vpop.permute.xlu0 %561  ;;  %v4039_v53 = vpop.permute.xlu1 %563 }
 0x130   : > { %847 = vrot.lane.b32.xlu0 %v3558_v14, %s3413_s4  ;;  %861 = vrot.lane.b32.xlu1 %v3579_v19, %s3413_s4 }
 0x132   : > { %v4041_v7 = vpop.permute.xlu0 %565  ;;  %v4047_v44 = vpop.permute.xlu1 %567 }
 0x133   : > { %5221 = vst [vmem:[#allocation68_spill] sm:$0xff] %v4041_v7  ;;  %5222 = vst [vmem:[#allocation69_spill] sm:$0xff] %v4047_v44 }
 0x134   : > { %863 = vrot.lane.b32.xlu0 %v3587_v21, %s3413_s4  ;;  %941 = vrot.lane.b32.xlu1 %v3538_v8, %s3414_s5 }
 0x136   : > { %v4049_v5 = vpop.permute.xlu0 %569  ;;  %v4055_v26 = vpop.permute.xlu1 %571 }
 0x137   : > { %5223 = vst [vmem:[#allocation70_spill] sm:$0xff] %v4049_v5  ;;  %5224 = vst [vmem:[#allocation71_spill] sm:$0xff] %v4055_v26 }
 0x138   : > { %943 = vrot.lane.b32.xlu0 %v3558_v14, %s3414_s5  ;;  %957 = vrot.lane.b32.xlu1 %v3579_v19, %s3414_s5 }
 0x13a   : > { %v4057_v32 = vpop.permute.xlu0 %573  ;;  %v4063_v44 = vpop.permute.xlu1 %575 }
 0x13c   : > { %959 = vrot.lane.b32.xlu0 %v3587_v21, %s3414_s5  ;;  %753 = vrot.lane.b32.xlu1 %v3546_v11, %s3412_s3 }
 0x13e   : > { %v4065_v5 = vpop.permute.xlu0 %577  ;;  %v4071_v7 = vpop.permute.xlu1 %579 }
 0x13f   : > { %5225 = vst [vmem:[#allocation72_spill] sm:$0xff] %v4071_v7 }
 0x140   : > { %769 = vrot.lane.b32.xlu0 %v3590_v22, %s3412_s3  ;;  %781 = vrot.lane.b32.xlu1 %v3625_v31, %s3412_s3 }
 0x142   : > { %v4073_v26 = vpop.permute.xlu0 %581  ;;  %v4079_v41 = vpop.permute.xlu1 %583 }
 0x143   : > { %5226 = vst [vmem:[#allocation73_spill] sm:$0xff] %v4073_v26  ;;  %5227 = vst [vmem:[#allocation74_spill] sm:$0xff] %v4079_v41 }
 0x144   : > { %783 = vrot.lane.b32.xlu0 %v3633_v33, %s3412_s3  ;;  %849 = vrot.lane.b32.xlu1 %v3546_v11, %s3413_s4 }
 0x146   : > { %v4081_v52 = vpop.permute.xlu0 %585  ;;  %v4087_v29 = vpop.permute.xlu1 %587 }
 0x147   : > { %5228 = vst [vmem:[#allocation75_spill] sm:$0xff] %v4081_v52  ;;  %5229 = vst [vmem:[#allocation76_spill] sm:$0xff] %v4087_v29 }
 0x148   : > { %865 = vrot.lane.b32.xlu0 %v3590_v22, %s3413_s4  ;;  %877 = vrot.lane.b32.xlu1 %v3625_v31, %s3413_s4 }
 0x14a   : > { %v4089_v7 = vpop.permute.xlu0 %589  ;;  %v4095_v26 = vpop.permute.xlu1 %591 }
 0x14b   : > { %5230 = vst [vmem:[#allocation77_spill] sm:$0xff] %v4089_v7  ;;  %5231 = vst [vmem:[#allocation78_spill] sm:$0xff] %v4095_v26 }
 0x14c   : > { %879 = vrot.lane.b32.xlu0 %v3633_v33, %s3413_s4  ;;  %945 = vrot.lane.b32.xlu1 %v3546_v11, %s3414_s5 }
 0x14e   : > { %v4097_v41 = vpop.permute.xlu0 %593  ;;  %v4103_v52 = vpop.permute.xlu1 %595 }
 0x14f   : > { %5232 = vst [vmem:[#allocation79_spill] sm:$0xff] %v4097_v41  ;;  %5233 = vst [vmem:[#allocation80_spill] sm:$0xff] %v4103_v52 }
 0x150   : > { %961 = vrot.lane.b32.xlu0 %v3590_v22, %s3414_s5  ;;  %973 = vrot.lane.b32.xlu1 %v3625_v31, %s3414_s5 }
 0x152   : > { %v4105_v29 = vpop.permute.xlu0 %597  ;;  %v4111_v7 = vpop.permute.xlu1 %599 }
 0x153   : > { %5234 = vst [vmem:[#allocation81_spill] sm:$0xff] %v4105_v29  ;;  %5235 = vst [vmem:[#allocation82_spill] sm:$0xff] %v4111_v7 }
 0x154   : > { %975 = vrot.lane.b32.xlu0 %v3633_v33, %s3414_s5  ;;  %701 = vrot.lane.b32.xlu1 %v3671_v43, %s3411_s30 }
 0x156   : > { %v4113_v26 = vpop.permute.xlu0 %601  ;;  %v4119_v41 = vpop.permute.xlu1 %603 }
 0x157   : > { %5236 = vst [vmem:[#allocation83_spill] sm:$0xff] %v4113_v26  ;;  %5237 = vst [vmem:[#allocation84_spill] sm:$0xff] %v4119_v41 }
 0x158   : > { %703 = vrot.lane.b32.xlu0 %v3679_v45, %s3411_s30  ;;  %755 = vrot.lane.b32.xlu1 %v3564_v15, %s3412_s3 }
 0x15a   : > { %v4121_v52 = vpop.permute.xlu0 %605  ;;  %v4127_v29 = vpop.permute.xlu1 %607 }
 0x15b   : > { %5238 = vst [vmem:[#allocation85_spill] sm:$0xff] %v4121_v52  ;;  %5239 = vst [vmem:[#allocation86_spill] sm:$0xff] %v4127_v29 }
 0x15c   : > { %771 = vrot.lane.b32.xlu0 %v3599_v24, %s3412_s3  ;;  %785 = vrot.lane.b32.xlu1 %v3636_v34, %s3412_s3 }
 0x15e   : > { %v4129_v7 = vpop.permute.xlu0 %609  ;;  %v4135_v26 = vpop.permute.xlu1 %611 }
 0x15f   : > { %5240 = vst [vmem:[#allocation87_spill] sm:$0xff] %v4129_v7  ;;  %5241 = vst [vmem:[#allocation88_spill] sm:$0xff] %v4135_v26 }
 0x160   : > { %797 = vrot.lane.b32.xlu0 %v3671_v43, %s3412_s3  ;;  %799 = vrot.lane.b32.xlu1 %v3679_v45, %s3412_s3 }
 0x162   : > { %v4137_v41 = vpop.permute.xlu0 %613  ;;  %v4143_v52 = vpop.permute.xlu1 %615 }
 0x163   : > { %5242 = vst [vmem:[#allocation89_spill] sm:$0xff] %v4137_v41  ;;  %5243 = vst [vmem:[#allocation90_spill] sm:$0xff] %v4143_v52 }
 0x164   : > { %851 = vrot.lane.b32.xlu0 %v3564_v15, %s3413_s4  ;;  %867 = vrot.lane.b32.xlu1 %v3599_v24, %s3413_s4 }
 0x166   : > { %v4145_v29 = vpop.permute.xlu0 %617  ;;  %v4151_v7 = vpop.permute.xlu1 %619 }
 0x167   : > { %5244 = vst [vmem:[#allocation91_spill] sm:$0xff] %v4145_v29  ;;  %5245 = vst [vmem:[#allocation92_spill] sm:$0xff] %v4151_v7 }
 0x168   : > { %881 = vrot.lane.b32.xlu0 %v3636_v34, %s3413_s4  ;;  %893 = vrot.lane.b32.xlu1 %v3671_v43, %s3413_s4 }
 0x16a   : > { %v4153_v26 = vpop.permute.xlu0 %653  ;;  %v4159_v41 = vpop.permute.xlu1 %655 }
 0x16b   : > { %5246 = vst [vmem:[#allocation93_spill] sm:$0xff] %v4153_v26  ;;  %5247 = vst [vmem:[#allocation94_spill] sm:$0xff] %v4159_v41 }
 0x16c   : > { %895 = vrot.lane.b32.xlu0 %v3679_v45, %s3413_s4  ;;  %947 = vrot.lane.b32.xlu1 %v3564_v15, %s3414_s5 }
 0x16e   : > { %v4161_v52 = vpop.permute.xlu0 %657  ;;  %v4167_v29 = vpop.permute.xlu1 %659 }
 0x16f   : > { %5248 = vst [vmem:[#allocation95_spill] sm:$0xff] %v4161_v52  ;;  %5249 = vst [vmem:[#allocation96_spill] sm:$0xff] %v4167_v29  ;;  %v3415_v52 = vmov 0  }
 0x170   : > { %963 = vrot.lane.b32.xlu0 %v3599_v24, %s3414_s5  ;;  %977 = vrot.lane.b32.xlu1 %v3636_v34, %s3414_s5 }
 0x171   : > { %3284 = vset.pattern.permute.xlu0 %v3415_v52  ;;  %3285 = vset.pattern.permute.xlu1 %v3415_v52 }
 0x172   : > { %v4169_v7 = vpop.permute.xlu0 %661  ;;  %v4175_v26 = vpop.permute.xlu1 %663 }
 0x173   : > { %5250 = vst [vmem:[#allocation97_spill] sm:$0xff] %v4169_v7  ;;  %5251 = vst [vmem:[#allocation98_spill] sm:$0xff] %v4175_v26 }
 0x174   : > { %989 = vrot.lane.b32.xlu0 %v3671_v43, %s3414_s5  ;;  %991 = vrot.lane.b32.xlu1 %v3679_v45, %s3414_s5 }
 0x176   : > { %v4177_v41 = vpop.permute.xlu0 %665  ;;  %v4183_v7 = vpop.permute.xlu1 %667 }
 0x177   : > { %5252 = vst [vmem:[#allocation99_spill] sm:$0xff] %v4177_v41  ;;  %5253 = vst [vmem:[#allocation100_spill] sm:$0xff] %v4183_v7 }
 0x178   : > { %705 = vrot.lane.b32.xlu0 %v3682_v46, %s3411_s30  ;;  %757 = vrot.lane.b32.xlu1 %v3541_v10, %s3412_s3 }
 0x17a   : > { %v4185_v29 = vpop.permute.xlu0 %669  ;;  %v4191_v41 = vpop.permute.xlu1 %671 }
 0x17b   : > { %5254 = vst [vmem:[#allocation101_spill] sm:$0xff] %v4185_v29  ;;  %5255 = vst [vmem:[#allocation102_spill] sm:$0xff] %v4191_v41 }
 0x17c   : > { %773 = vrot.lane.b32.xlu0 %v3602_v25, %s3412_s3  ;;  %787 = vrot.lane.b32.xlu1 %v3645_v36, %s3412_s3 }
 0x17e   : > { %v4193_v26 = vpop.permute.xlu0 %673  ;;  %v4199_v52 = vpop.permute.xlu1 %675 }
 0x17f   : > { %5256 = vst [vmem:[#allocation103_spill] sm:$0xff] %v4193_v26  ;;  %5257 = vst [vmem:[#allocation104_spill] sm:$0xff] %v4199_v52 }
 0x180   : > { %801 = vrot.lane.b32.xlu0 %v3682_v46, %s3412_s3  ;;  %853 = vrot.lane.b32.xlu1 %v3541_v10, %s3413_s4 }
 0x182   : > { %v4201_v7 = vpop.permute.xlu0 %677  ;;  %v4207_v29 = vpop.permute.xlu1 %679 }
 0x183   : > { %5258 = vst [vmem:[#allocation105_spill] sm:$0xff] %v4201_v7  ;;  %5259 = vst [vmem:[#allocation106_spill] sm:$0xff] %v4207_v29 }
 0x184   : > { %869 = vrot.lane.b32.xlu0 %v3602_v25, %s3413_s4  ;;  %883 = vrot.lane.b32.xlu1 %v3645_v36, %s3413_s4 }
 0x186   : > { %v4209_v41 = vpop.permute.xlu0 %681  ;;  %v4215_v26 = vpop.permute.xlu1 %683 }
 0x187   : > { %5260 = vst [vmem:[#allocation107_spill] sm:$0xff] %v4209_v41  ;;  %5261 = vst [vmem:[#allocation108_spill] sm:$0xff] %v4215_v26 }
 0x188   : > { %897 = vrot.lane.b32.xlu0 %v3682_v46, %s3413_s4  ;;  %949 = vrot.lane.b32.xlu1 %v3541_v10, %s3414_s5 }
 0x18a   : > { %v4217_v52 = vpop.permute.xlu0 %685  ;;  %v4223_v7 = vpop.permute.xlu1 %687 }
 0x18b   : > { %5262 = vst [vmem:[#allocation109_spill] sm:$0xff] %v4217_v52  ;;  %5263 = vst [vmem:[#allocation110_spill] sm:$0xff] %v4223_v7 }
 0x18c   : > { %965 = vrot.lane.b32.xlu0 %v3602_v25, %s3414_s5  ;;  %979 = vrot.lane.b32.xlu1 %v3645_v36, %s3414_s5 }
 0x18e   : > { %v4225_v29 = vpop.permute.xlu0 %689  ;;  %v4231_v41 = vpop.permute.xlu1 %691 }
 0x18f   : > { %5264 = vst [vmem:[#allocation111_spill] sm:$0xff] %v4225_v29  ;;  %5265 = vst [vmem:[#allocation112_spill] sm:$0xff] %v4231_v41 }
 0x190   : > { %993 = vrot.lane.b32.xlu0 %v3682_v46, %s3414_s5  ;;  %707 = vrot.lane.b32.xlu1 %v3691_v48, %s3411_s30 }
 0x192   : > { %v4233_v26 = vpop.permute.xlu0 %693  ;;  %v4239_v52 = vpop.permute.xlu1 %695 }
 0x193   : > { %5266 = vst [vmem:[#allocation113_spill] sm:$0xff] %v4233_v26  ;;  %5267 = vst [vmem:[#allocation114_spill] sm:$0xff] %v4239_v52 }
 0x194   : > { %759 = vrot.lane.b32.xlu0 %v3552_v12, %s3412_s3  ;;  %775 = vrot.lane.b32.xlu1 %v3610_v27, %s3412_s3 }
 0x196   : > { %v4241_v7 = vpop.permute.xlu0 %697  ;;  %v4247_v46 = vpop.permute.xlu1 %749 }
 0x197   : > { %5268 = vst [vmem:[#allocation115_spill] sm:$0xff] %v4241_v7  ;;  %5269 = vst [vmem:[#allocation116_spill] sm:$0xff] %v4247_v46 }
 0x198   : > { %789 = vrot.lane.b32.xlu0 %v3648_v37, %s3412_s3  ;;  %803 = vrot.lane.b32.xlu1 %v3691_v48, %s3412_s3 }
 0x19a   : > { %v4249_v41 = vpop.permute.xlu0 %751  ;;  %v4255_v26 = vpop.permute.xlu1 %765 }
 0x19b   : > { %5270 = vst [vmem:[#allocation117_spill] sm:$0xff] %v4249_v41  ;;  %5271 = vst [vmem:[#allocation118_spill] sm:$0xff] %v4255_v26 }
 0x19c   : > { %855 = vrot.lane.b32.xlu0 %v3552_v12, %s3413_s4  ;;  %871 = vrot.lane.b32.xlu1 %v3610_v27, %s3413_s4 }
 0x19e   : > { %v4257_v52 = vpop.permute.xlu0 %767  ;;  %v4263_v7 = vpop.permute.xlu1 %845 }
 0x19f   : > { %5272 = vst [vmem:[#allocation119_spill] sm:$0xff] %v4257_v52 }
 0x1a0   : > { %885 = vrot.lane.b32.xlu0 %v3648_v37, %s3413_s4  ;;  %899 = vrot.lane.b32.xlu1 %v3691_v48, %s3413_s4 }
 0x1a2   : > { %v4265_v29 = vpop.permute.xlu0 %847  ;;  %v4271_v41 = vpop.permute.xlu1 %861 }
 0x1a3   : > { %5273 = vst [vmem:[#allocation120_spill] sm:$0xff] %v4271_v41 }
 0x1a4   : > { %951 = vrot.lane.b32.xlu0 %v3552_v12, %s3414_s5  ;;  %967 = vrot.lane.b32.xlu1 %v3610_v27, %s3414_s5 }
 0x1a6   : > { %v4273_v26 = vpop.permute.xlu0 %863  ;;  %v4279_v52 = vpop.permute.xlu1 %941 }
 0x1a7   : > { %5274 = vst [vmem:[#allocation121_spill] sm:$0xff] %v4273_v26 }
 0x1a8   : > { %981 = vrot.lane.b32.xlu0 %v3648_v37, %s3414_s5  ;;  %995 = vrot.lane.b32.xlu1 %v3691_v48, %s3414_s5 }
 0x1aa   : > { %v4281_v46 = vpop.permute.xlu0 %943  ;;  %v4287_v12 = vpop.permute.xlu1 %957 }
 0x1ab   : > { %5275 = vst [vmem:[#allocation122_spill] sm:$0xff] %v4287_v12 }
 0x1ac   : > { %709 = vrot.lane.b32.xlu0 %v3694_v49, %s3411_s30  ;;  %761 = vrot.lane.b32.xlu1 %v3567_v16, %s3412_s3 }
 0x1ae   : > { %v4289_v41 = vpop.permute.xlu0 %959  ;;  %v4295_v37 = vpop.permute.xlu1 %753 }
 0x1af   : > { %5276 = vst [vmem:[#allocation123_spill] sm:$0xff] %v4295_v37 }
 0x1b0   : > { %777 = vrot.lane.b32.xlu0 %v3613_v28, %s3412_s3  ;;  %791 = vrot.lane.b32.xlu1 %v3656_v39, %s3412_s3 }
 0x1b2   : > { %v4297_v27 = vpop.permute.xlu0 %769  ;;  %v4303_v48 = vpop.permute.xlu1 %781 }
 0x1b3   : > { %5277 = vst [vmem:[#allocation124_spill] sm:$0xff] %v4297_v27  ;;  %5278 = vst [vmem:[#allocation125_spill] sm:$0xff] %v4303_v48 }
 0x1b4   : > { %805 = vrot.lane.b32.xlu0 %v3694_v49, %s3412_s3  ;;  %857 = vrot.lane.b32.xlu1 %v3567_v16, %s3413_s4 }
 0x1b6   : > { %v4305_v12 = vpop.permute.xlu0 %783  ;;  %v4311_v26 = vpop.permute.xlu1 %849 }
 0x1b7   : > { %5279 = vst [vmem:[#allocation126_spill] sm:$0xff] %v4305_v12  ;;  %5280 = vst [vmem:[#allocation127_spill] sm:$0xff] %v4311_v26 }
 0x1b8   : > { %873 = vrot.lane.b32.xlu0 %v3613_v28, %s3413_s4  ;;  %887 = vrot.lane.b32.xlu1 %v3656_v39, %s3413_s4 }
 0x1ba   : > { %v4313_v37 = vpop.permute.xlu0 %865  ;;  %v4319_v27 = vpop.permute.xlu1 %877 }
 0x1bb   : > { %5281 = vst [vmem:[#allocation128_spill] sm:$0xff] %v4313_v37  ;;  %5282 = vst [vmem:[#allocation129_spill] sm:$0xff] %v4319_v27 }
 0x1bc   : > { %901 = vrot.lane.b32.xlu0 %v3694_v49, %s3413_s4  ;;  %953 = vrot.lane.b32.xlu1 %v3567_v16, %s3414_s5 }
 0x1be   : > { %v4321_v48 = vpop.permute.xlu0 %879  ;;  %v4327_v12 = vpop.permute.xlu1 %945 }
 0x1bf   : > { %5283 = vst [vmem:[#allocation130_spill] sm:$0xff] %v4321_v48 }
 0x1c0   : > { %969 = vrot.lane.b32.xlu0 %v3613_v28, %s3414_s5  ;;  %983 = vrot.lane.b32.xlu1 %v3656_v39, %s3414_s5 }
 0x1c2   : > { %v4329_v26 = vpop.permute.xlu0 %961  ;;  %v4335_v37 = vpop.permute.xlu1 %973 }
 0x1c3   : > { %5284 = vst [vmem:[#allocation131_spill] sm:$0xff] %v4335_v37  ;;  %v3416_v37 = vmov 1934713408  }
 0x1c4   : > { %997 = vrot.lane.b32.xlu0 %v3694_v49, %s3414_s5  ;;  %711 = vrot.lane.b32.xlu1 %v3702_v51, %s3411_s30  ;;  %v1039_v48 = vunpack.c.l.s4 %v3416_v37 }
 0x1c6   : > { %v4337_v27 = vpop.permute.xlu0 %975  ;;  %v4343_v28 = vpop.permute.xlu1 %701 }
 0x1c7   : > { %5285 = vst [vmem:[#allocation132_spill] sm:$0xff] %v4337_v27  ;;  %5286 = vst [vmem:[#allocation133_spill] sm:$0xff] %v4343_v28  ;;  %v1040_v27 = vunpack.c.0.s8 %v1039_v48 }
 0x1c8   : > { %763 = vrot.lane.b32.xlu0 %v3576_v18, %s3412_s3  ;;  %779 = vrot.lane.b32.xlu1 %v3622_v30, %s3412_s3 }
 0x1c9   : > { %v4374_v37 = vsub.s32 %v1040_v27, %v3530_v3  ;;  %v1421_v27 = vcombine.low %v3564_v15, %v3791_v59  ;;  %v1173_v15 = vcombine.low %v3903_v61, %v4031_v57 }
 0x1ca   : > { %v4345_v16 = vpop.permute.xlu0 %703  ;;  %v4351_v49 = vpop.permute.xlu1 %755 }
 0x1cb   : > { %5287 = vst [vmem:[#allocation134_spill] sm:$0xff] %v4345_v16  ;;  %5288 = vst [vmem:[#allocation135_spill] sm:$0xff] %v4351_v49  ;;  %v1428_v59 = vrot.slane %v1421_v27, %v4374_v37  ;;  %v5298_v27 = vld [vmem:[#allocation42_spill] sm:$0xff] }
 0x1cc   : > { %793 = vrot.lane.b32.xlu0 %v3659_v40, %s3412_s3  ;;  %807 = vrot.lane.b32.xlu1 %v3702_v51, %s3412_s3 }
 0x1ce   : > { %v4353_v39 = vpop.permute.xlu0 %771  ;;  %v4359_v28 = vpop.permute.xlu1 %785 }
 0x1cf   : > { %5289 = vst [vmem:[#allocation136_spill] sm:$0xff] %v4353_v39  ;;  %5290 = vst [vmem:[#allocation137_spill] sm:$0xff] %v4359_v28  ;;  %v1037_v28 = vcombine.low %v3538_v8, %v3769_v54  ;;  %v1069_v8 = vcombine.low %v3579_v19, %v3801_v62  ;;  %v1357_v62 = vcombine.low %v3636_v34, %v3841_v20 }
 0x1d0   : > { %859 = vrot.lane.b32.xlu0 %v3576_v18, %s3413_s4  ;;  %875 = vrot.lane.b32.xlu1 %v3622_v30, %s3413_s4  ;;  %v1205_v34 = vcombine.low %v3935_v47, %v4063_v44  ;;  %v5296_v47 = vld [vmem:[#allocation35_spill] sm:$0xff] }
 0x1d1   : > { %v4422_v61 = vrot.slane %v1069_v8, %v4374_v37 }
 0x1d2   : > { %v4361_v16 = vpop.permute.xlu0 %797  ;;  %v4367_v49 = vpop.permute.xlu1 %799 }
 0x1d3   : > { %5291 = vst [vmem:[#allocation138_spill] sm:$0xff] %v4361_v16  ;;  %5292 = vst [vmem:[#allocation139_spill] sm:$0xff] %v4367_v49  ;;  %v1293_v16 = vcombine.low %v3546_v11, %v3775_v55  ;;  %v1549_v49 = vcombine.low %v3541_v10, %v3777_v56  ;;  %v1197_v11 = vcombine.low %v3587_v21, %v3807_v63 }
 0x1d4   : > { %889 = vrot.lane.b32.xlu0 %v3659_v40, %s3413_s4  ;;  %903 = vrot.lane.b32.xlu1 %v3702_v51, %s3413_s4  ;;  %v1045_v10 = vcombine.low %v3897_v9, %v4025_v6  ;;  %v1044_v55 = vrot.slane %v1037_v28, %v4374_v37  ;;  %v1453_v21 = vcombine.low %v3599_v24, %v3815_v2 }
 0x1d5   : > { %v1300_v56 = vrot.slane %v1293_v16, %v4374_v37  ;;  %v1429_v28 = vcombine.low %v3911_v35, %v4039_v53  ;;  %v1101_v24 = vcombine.low %v3625_v31, %v3833_v13  ;;  %v1180_v63 = vrot.slane %v1173_v15, %v4374_v37  ;;  %v5295_v35 = vld [vmem:[#allocation23_spill] sm:$0xff] }
 0x1d6   : > { %v4369_v39 = vpop.permute.xlu0 %851  ;;  %v4380_v48 = vpop.permute.xlu1 %867  ;;  %v1133_v13 = vcombine.low %v3671_v43, %v3865_v38  ;;  %v4476_v43 = vrot.slane %v1357_v62, %v4374_v37  ;;  %v5303_v62 = vld [vmem:[#allocation52_spill] sm:$0xff] }
 0x1d7   : > { %5293 = vst [vmem:[#allocation140_spill] sm:$0xff] %v4369_v39  ;;  %v1165_v39 = vcombine.low %v3558_v14, %v3785_v58  ;;  %v1325_v14 = vcombine.low %v3590_v22, %v3809_v1  ;;  %v1301_v58 = vcombine.low %v3905_v0, %v4033_v50  ;;  %v4417_v22 = vrot.slane %v1549_v49, %v4374_v37 }
 0x1d8   : > { %955 = vrot.lane.b32.xlu0 %v3576_v18, %s3414_s5  ;;  %971 = vrot.lane.b32.xlu1 %v3622_v30, %s3414_s5  ;;  %v4429_v0 = vrot.slane %v1197_v11, %v4374_v37  ;;  %v1229_v49 = vcombine.low %v3633_v33, %v3839_v17  ;;  %v1077_v1 = vcombine.low %v3929_v60, %v4057_v32  ;;  %v5294_v17 = vld [vmem:[#allocation46_spill] sm:$0xff] }
 0x1d9   : > { %v1172_v57 = vrot.slane %v1165_v39, %v4374_v37  ;;  %v1052_v39 = vrot.slane %v1045_v10, %v4374_v37  ;;  %v4437_v53 = vrot.slane %v1325_v14, %v4374_v37  ;;  %v4449_v33 = vrot.slane %v1453_v21, %v4374_v37 }
 0x1da   : > { %v4392_v54 = vpop.permute.xlu0 %881  ;;  %v4407_v19 = vpop.permute.xlu1 %893  ;;  %v1308_v2 = vrot.slane %v1301_v58, %v4374_v37  ;;  %v1436_v6 = vrot.slane %v1429_v28, %v4374_v37  ;;  %v1485_v60 = vcombine.low %v3645_v36, %v3847_v23  ;;  %v1333_v20 = vcombine.low %v5294_v17, %v4065_v5  ;;  %v5297_v5 = vld [vmem:[#allocation68_spill] sm:$0xff] }
 0x1db   : > { %v4468_v50 = vrot.slane %v1101_v24, %v4374_v37  ;;  %v4471_v44 = vrot.slane %v1229_v49, %v4374_v37  ;;  %v1261_v36 = vcombine.low %v3679_v45, %v5296_v47  ;;  %v2190_v23 = vcombine.low %v1044_v55, %v1052_v39  ;;  %v5300_v24 = vld [vmem:[#allocation47_spill] sm:$0xff] }
 0x1dc   : > { %985 = vrot.lane.b32.xlu0 %v3659_v40, %s3414_s5  ;;  %999 = vrot.lane.b32.xlu1 %v3702_v51, %s3414_s5  ;;  %v2207_v38 = vcombine.low %v1172_v57, %v1180_v63  ;;  %v1557_v8 = vcombine.low %v5298_v27, %v5297_v5  ;;  %v1084_v11 = vrot.slane %v1077_v1, %v4374_v37  ;;  %v5299_v57 = vld [vmem:[#allocation72_spill] sm:$0xff] }
 0x1dd   : > { %v2224_v14 = vcombine.low %v1300_v56, %v1308_v2  ;;  %v2241_v15 = vcombine.low %v1428_v59, %v1436_v6  ;;  %v1212_v21 = vrot.slane %v1205_v34, %v4374_v37  ;;  %v1061_v45 = vcombine.low %v4263_v7, %v4279_v52  ;;  %v5301_v7 = vld [vmem:[#allocation9_spill] sm:$0xff]  ;;  %v5304_v1 = vld [vmem:[#allocation116_spill] sm:$0xff] }
 0x1de   : > { %v4424_v16 = vpop.permute.xlu0 %895  ;;  %v4446_v31 = vpop.permute.xlu1 %947  ;;  %v4489_v55 = vrot.slane %v1485_v60, %v4374_v37  ;;  %v4492_v58 = vrot.slane %v1133_v13, %v4374_v37  ;;  %v1340_v28 = vrot.slane %v1333_v20, %v4374_v37  ;;  %v1461_v49 = vcombine.low %v5300_v24, %v5299_v57  ;;  %v5302_v59 = vld [vmem:[#allocation77_spill] sm:$0xff]  ;;  %v5342_v40 = vld [vmem:[#allocation96_spill] sm:$0xff] }
 0x1df   : > { %v4502_v56 = vrot.slane %v1261_v36, %v4374_v37  ;;  %v4505_v52 = vrot.slane %v2190_v23, %v5301_v7  ;;  %v1109_v63 = vcombine.low %v5303_v62, %v5302_v59  ;;  %v5305_v2 = vld [vmem:[#allocation93_spill] sm:$0xff]  ;;  %v4512_v34 = vrot.slane %v2207_v38, %v5301_v7  ;;  %v5313_v59 = vld [vmem:[#allocation119_spill] sm:$0xff]  ;;  %v5314_v62 = vld [vmem:[#allocation102_spill] sm:$0xff] }
 0x1e0   : > { %699 = vrot.lane.b32.xlu0 %v3668_v42, %s3411_s30  ;;  %713 = vrot.lane.b32.xlu1 %v5295_v35, %s3411_s30  ;;  %v1053_v6 = vcombine.low %v5305_v2, %v5304_v1  ;;  %v4515_v60 = vrot.slane %v1557_v8, %v4374_v37  ;;  %v2326_v13 = vcombine.low %v4422_v61, %v1084_v11  ;;  %v5308_v8 = vld [vmem:[#allocation121_spill] sm:$0xff] }
 0x1e1   : > { %v1189_v17 = vcombine.low %v4265_v29, %v4281_v46  ;;  %v4525_v47 = vrot.slane %v2224_v14, %v5301_v7  ;;  %v4528_v36 = vrot.slane %v2241_v15, %v5301_v7  ;;  %v2343_v23 = vcombine.low %v4429_v0, %v1212_v21  ;;  %v5306_v46 = vld [vmem:[#allocation117_spill] sm:$0xff]  ;;  %v5307_v29 = vld [vmem:[#allocation94_spill] sm:$0xff]  ;;  %v5310_v15 = vld [vmem:[#allocation48_spill] sm:$0xff] }
 0x1e2   : > { %v4463_v32 = vpop.permute.xlu0 %963  ;;  %v4483_v10 = vpop.permute.xlu1 %977  ;;  %v1068_v38 = vrot.slane %v1061_v45, %v4374_v37  ;;  %v2360_v61 = vcombine.low %v4437_v53, %v1340_v28  ;;  %v1468_v5 = vrot.slane %v1461_v49, %v4374_v37  ;;  %v1181_v27 = vcombine.low %v5307_v29, %v5306_v46  ;;  %v5309_v14 = vld [vmem:[#allocation73_spill] sm:$0xff]  ;;  %v5311_v45 = vld [vmem:[#allocation122_spill] sm:$0xff]  ;;  %v5312_v28 = vld [vmem:[#allocation120_spill] sm:$0xff] }
 0x1e3   : > { %v1221_v11 = vcombine.low %v5308_v8, %v4289_v41  ;;  %v1589_v0 = vcombine.low %v5310_v15, %v5309_v14  ;;  %v1116_v21 = vrot.slane %v1109_v63, %v4374_v37  ;;  %v1060_v53 = vrot.slane %v1053_v6, %v4374_v37  ;;  %v5315_v46 = vld [vmem:[#allocation78_spill] sm:$0xff]  ;;  %v5316_v29 = vld [vmem:[#allocation53_spill] sm:$0xff] }
 0x1e4   : > { %795 = vrot.lane.b32.xlu0 %v3668_v42, %s3412_s3  ;;  %809 = vrot.lane.b32.xlu1 %v5295_v35, %s3412_s3  ;;  %v1093_v24 = vcombine.low %v5312_v28, %v5311_v45  ;;  %v4551_v41 = vrot.slane %v2326_v13, %v5301_v7  ;;  %v1213_v1 = vcombine.low %v5314_v62, %v5313_v59  ;;  %v5317_v14 = vld [vmem:[#allocation118_spill] sm:$0xff]  ;;  %v5318_v15 = vld [vmem:[#allocation101_spill] sm:$0xff]  ;;  %v5319_v62 = vld [vmem:[#allocation128_spill] sm:$0xff] }
 0x1e5   : > { %v1196_v2 = vrot.slane %v1189_v17, %v4374_v37  ;;  %v4561_v6 = vrot.slane %v2343_v23, %v5301_v7  ;;  %v1237_v8 = vcombine.low %v5316_v29, %v5315_v46  ;;  %v1085_v13 = vcombine.low %v5318_v15, %v5317_v14  ;;  %v5322_v29 = vld [vmem:[#allocation127_spill] sm:$0xff]  ;;  %v5323_v15 = vld [vmem:[#allocation24_spill] sm:$0xff] }
 0x1e6   : > { %v4497_v39 = vpop.permute.xlu0 %989  ;;  %v4522_v20 = vpop.permute.xlu1 %991  ;;  %v2191_v45 = vcombine.low %v1060_v53, %v1068_v38  ;;  %v2377_v28 = vcombine.low %v4449_v33, %v1468_v5  ;;  %v1188_v59 = vrot.slane %v1181_v27, %v4374_v37  ;;  %v1228_v17 = vrot.slane %v1221_v11, %v4374_v37  ;;  %v5320_v11 = vld [vmem:[#allocation124_spill] sm:$0xff] }
 0x1e7   : > { %v1349_v49 = vcombine.low %v5319_v62, %v4329_v26  ;;  %v4577_v23 = vrot.slane %v2360_v61, %v5301_v7  ;;  %v4580_v46 = vrot.slane %v1589_v0, %v4374_v37  ;;  %v2462_v33 = vcombine.low %v4468_v50, %v1116_v21  ;;  %v5321_v26 = vld [vmem:[#allocation103_spill] sm:$0xff] }
 0x1e8   : > { %891 = vrot.lane.b32.xlu0 %v3668_v42, %s3413_s4  ;;  %905 = vrot.lane.b32.xlu1 %v5295_v35, %s3413_s4  ;;  %v1100_v38 = vrot.slane %v1093_v24, %v4374_v37  ;;  %v1220_v5 = vrot.slane %v1213_v1, %v4374_v37  ;;  %v2208_v27 = vcombine.low %v1188_v59, %v1196_v2  ;;  %v5324_v24 = vld [vmem:[#allocation123_spill] sm:$0xff] }
 0x1e9   : > { %v1341_v53 = vcombine.low %v5321_v26, %v5320_v11  ;;  %v1317_v14 = vcombine.low %v5322_v29, %v4327_v12  ;;  %v4594_v0 = vrot.slane %v1237_v8, %v4374_v37  ;;  %v1092_v50 = vrot.slane %v1085_v13, %v4374_v37  ;;  %v5325_v1 = vld [vmem:[#allocation95_spill] sm:$0xff]  ;;  %v5326_v11 = vld [vmem:[#allocation132_spill] sm:$0xff]  ;;  %v5327_v26 = vld [vmem:[#allocation130_spill] sm:$0xff] }
 0x1ea   : > { %v4538_v57 = vpop.permute.xlu0 %705  ;;  %v4558_v63 = vpop.permute.xlu1 %757  ;;  %v2205_v21 = vrot.slane %v2191_v45, %v5301_v7  ;;  %v1309_v2 = vcombine.low %v5325_v1, %v5324_v24  ;;  %v4601_v59 = vrot.slane %v2377_v28, %v5301_v7  ;;  %v2344_v62 = vcombine.low %v1220_v5, %v1228_v17  ;;  %v5328_v13 = vld [vmem:[#allocation79_spill] sm:$0xff]  ;;  %v5329_v45 = vld [vmem:[#allocation54_spill] sm:$0xff] }
 0x1eb   : > { %v1356_v12 = vrot.slane %v1349_v49, %v4374_v37  ;;  %v1253_v29 = vcombine.low %v5327_v26, %v5326_v11  ;;  %v4611_v8 = vrot.slane %v2462_v33, %v5301_v7  ;;  %v1365_v24 = vcombine.low %v5329_v45, %v5328_v13  ;;  %v5330_v28 = vld [vmem:[#allocation131_spill] sm:$0xff]  ;;  %v5332_v11 = vld [vmem:[#allocation126_spill] sm:$0xff]  ;;  %v5335_v13 = vld [vmem:[#allocation109_spill] sm:$0xff] }
 0x1ec   : > { %987 = vrot.lane.b32.xlu0 %v3668_v42, %s3414_s5  ;;  %1001 = vrot.lane.b32.xlu1 %v5295_v35, %s3414_s5  ;;  %v2327_v1 = vcombine.low %v1092_v50, %v1100_v38  ;;  %v5331_v35 = vld [vmem:[#allocation129_spill] sm:$0xff]  ;;  %v2222_v49 = vrot.slane %v2208_v27, %v5301_v7  ;;  %v1348_v5 = vrot.slane %v1341_v53, %v4374_v37  ;;  %v5333_v26 = vld [vmem:[#allocation110_spill] sm:$0xff] }
 0x1ed   : > { %v1125_v17 = vcombine.low %v5331_v35, %v5330_v28  ;;  %v1245_v42 = vcombine.low %v5333_v26, %v5332_v11  ;;  %v1324_v51 = vrot.slane %v1317_v14, %v4374_v37  ;;  %v2479_v38 = vcombine.low %v4471_v44, %v4594_v0  ;;  %v5334_v35 = vld [vmem:[#allocation125_spill] sm:$0xff] }
 0x1ee   : > { %v4572_v9 = vpop.permute.xlu0 %773  ;;  %v4591_v61 = vpop.permute.xlu1 %787  ;;  %v1316_v50 = vrot.slane %v1309_v2, %v4374_v37  ;;  %v1117_v27 = vcombine.low %v5335_v13, %v5334_v35  ;;  %v2206_v53 = vcombine.low %v4505_v52, %v2205_v21  ;;  %v2358_v45 = vrot.slane %v2344_v62, %v5301_v7  ;;  %v5336_v21 = vld [vmem:[#allocation140_spill] sm:$0xff] }
 0x1ef   : > { %v2361_v28 = vcombine.low %v1348_v5, %v1356_v12  ;;  %v1260_v14 = vrot.slane %v1253_v29, %v4374_v37  ;;  %v1477_v11 = vcombine.low %v4380_v48, %v4463_v32  ;;  %v4641_v44 = vrot.slane %v1365_v24, %v4374_v37  ;;  %v5337_v29 = vld [vmem:[#allocation136_spill] sm:$0xff]  ;;  %v5339_v24 = vld [vmem:[#allocation85_spill] sm:$0xff] }
 0x1f0   : > { %715 = vrot.lane.b32.xlu0 %v5323_v15, %s3411_s30  ;;  %811 = vrot.lane.b32.xlu1 %v5323_v15, %s3412_s3  ;;  %v2341_v0 = vrot.slane %v2327_v1, %v5301_v7  ;;  %v1132_v52 = vrot.slane %v1125_v17, %v4374_v37  ;;  %v1445_v2 = vcombine.low %v5336_v21, %v4446_v31  ;;  %v5338_v48 = vld [vmem:[#allocation104_spill] sm:$0xff]  ;;  %v5341_v17 = vld [vmem:[#allocation135_spill] sm:$0xff]  ;;  %v5343_v21 = vld [vmem:[#allocation138_spill] sm:$0xff] }
 0x1f1   : > { %v1252_v62 = vrot.slane %v1245_v42, %v4374_v37  ;;  %v2225_v12 = vcombine.low %v1316_v50, %v1324_v51  ;;  %v1469_v32 = vcombine.low %v5338_v48, %v5337_v29  ;;  %v2223_v35 = vcombine.low %v4512_v34, %v2222_v49  ;;  %v5340_v13 = vld [vmem:[#allocation60_spill] sm:$0xff]  ;;  %v5344_v29 = vld [vmem:[#allocation133_spill] sm:$0xff] }
 0x1f2   : > { %v4606_v3 = vpop.permute.xlu0 %801  ;;  %v4624_v33 = vpop.permute.xlu1 %853  ;;  %v1124_v1 = vrot.slane %v1117_v27, %v4374_v37  ;;  %v1437_v30 = vcombine.low %v5342_v40, %v5341_v17  ;;  %v1157_v42 = vcombine.low %v4407_v19, %v4497_v39  ;;  %v2375_v51 = vrot.slane %v2361_v28, %v5301_v7  ;;  %v5345_v19 = vld [vmem:[#allocation80_spill] sm:$0xff]  ;;  %v5346_v39 = vld [vmem:[#allocation55_spill] sm:$0xff] }
 0x1f3   : > { %v2480_v31 = vcombine.low %v1252_v62, %v1260_v14  ;;  %v1484_v50 = vrot.slane %v1477_v11, %v4374_v37  ;;  %v2359_v34 = vcombine.low %v4561_v6, %v2358_v45  ;;  %v1149_v27 = vcombine.low %v5344_v29, %v5343_v21  ;;  %v5352_v29 = vld [vmem:[#allocation139_spill] sm:$0xff] }
 0x1f4   : > { %907 = vrot.lane.b32.xlu0 %v5323_v15, %s3413_s4  ;;  %1003 = vrot.lane.b32.xlu1 %v5323_v15, %s3414_s5  ;;  %v1141_v15 = vcombine.low %v5340_v13, %v5339_v24  ;;  %v2463_v49 = vcombine.low %v1124_v1, %v1132_v52  ;;  %v1452_v48 = vrot.slane %v1445_v2, %v4374_v37  ;;  %v5348_v2 = vld [vmem:[#allocation111_spill] sm:$0xff] }
 0x1f5   : > { %v1381_v40 = vcombine.low %v4392_v54, %v4483_v10  ;;  %v1493_v28 = vcombine.low %v5346_v39, %v5345_v19  ;;  %v2239_v14 = vrot.slane %v2225_v12, %v5301_v7  ;;  %v1476_v11 = vrot.slane %v1469_v32, %v4374_v37 }
 0x1f6   : > { %v4636_v26 = vpop.permute.xlu0 %869  ;;  %v4650_v5 = vpop.permute.xlu1 %883  ;;  %v2342_v6 = vcombine.low %v4551_v41, %v2341_v0  ;;  %v1148_v45 = vrot.slane %v1141_v15, %v4374_v37  ;;  %v1444_v52 = vrot.slane %v1437_v30, %v4374_v37  ;;  %v1164_v54 = vrot.slane %v1157_v42, %v4374_v37 }
 0x1f7   : > { %v2494_v10 = vrot.slane %v2480_v31, %v5301_v7  ;;  %v2378_v13 = vcombine.low %v1476_v11, %v1484_v50  ;;  %v2376_v32 = vcombine.low %v4577_v23, %v2375_v51  ;;  %v2477_v41 = vrot.slane %v2463_v49, %v5301_v7  ;;  %v5349_v31 = vld [vmem:[#allocation97_spill] sm:$0xff]  ;;  %v5350_v23 = vld [vmem:[#allocation86_spill] sm:$0xff] }
 0x1f8   : > { %2735 = vperm.xlu0 %3284, %v2206_v53   ;;  %2738 = vperm.xlu1 %3285, %v2223_v35   ;;  %v5347_v35 = vld [vmem:[#allocation137_spill] sm:$0xff]  ;;  %v1156_v15 = vrot.slane %v1149_v27, %v4374_v37  ;;  %v2242_v0 = vcombine.low %v1444_v52, %v1452_v48  ;;  %v1388_v30 = vrot.slane %v1381_v40, %v4374_v37  ;;  %v5353_v27 = vld [vmem:[#allocation134_spill] sm:$0xff]  ;;  %v5354_v52 = vld [vmem:[#allocation112_spill] sm:$0xff] }
 0x1f9   : > { %v1373_v24 = vcombine.low %v5348_v2, %v5347_v35  ;;  %v2487_v17 = vrot.slane %v2479_v38, %v5301_v7  ;;  %v1285_v42 = vcombine.low %v4424_v16, %v4522_v20  ;;  %v1565_v50 = vcombine.low %v5349_v31, %v4558_v63  ;;  %v5351_v51 = vld [vmem:[#allocation61_spill] sm:$0xff] }
 0x1fa   : > { %v4662_v53 = vpop.permute.xlu0 %897  ;;  %v950_v62 = vpop.permute.xlu1 %949  ;;  %v1269_v49 = vcombine.low %v5351_v51, %v5350_v23  ;;  %v1277_v48 = vcombine.low %v5353_v27, %v5352_v29  ;;  %v2599_v40 = vcombine.low %v1156_v15, %v1164_v54  ;;  %v2392_v38 = vrot.slane %v2378_v13, %v5301_v7  ;;  %v5355_v54 = vld [vmem:[#allocation105_spill] sm:$0xff] }
 0x1fb   : > { %v1573_v12 = vcombine.low %v4624_v33, %v950_v62  ;;  %v1380_v21 = vrot.slane %v1373_v24, %v4374_v37  ;;  %v2495_v19 = vcombine.low %v2487_v17, %v2494_v10  ;;  %v2256_v39 = vrot.slane %v2242_v0, %v5301_v7  ;;  %v5356_v17 = vld [vmem:[#allocation87_spill] sm:$0xff] }
 0x1fc   : > { %2762 = vperm.xlu0 %3284, %v2359_v34   ;;  %2759 = vperm.xlu1 %3285, %v2342_v6   ;;  %v2240_v34 = vcombine.low %v4525_v47, %v2239_v14  ;;  %v2598_v47 = vcombine.low %v4492_v58, %v1148_v45  ;;  %v2478_v11 = vcombine.low %v4611_v8, %v2477_v41 }
 0x1fd   : > { %v1580_v16 = vrot.slane %v1573_v12, %v4374_v37  ;;  %v2497_v14 = vcombine.low %v1380_v21, %v1388_v30  ;;  %v1292_v62 = vrot.slane %v1285_v42, %v4374_v37  ;;  %v1572_v6 = vrot.slane %v1565_v50, %v4374_v37  ;;  %v5357_v42 = vld [vmem:[#allocation62_spill] sm:$0xff]  ;;  %v5360_v21 = vld [vmem:[#allocation19_spill] sm:$0xff] }
 0x1fe   : > { %v966_v1 = vpop.permute.xlu0 %965  ;;  %v980_v33 = vpop.permute.xlu1 %979  ;;  %v1501_v35 = vcombine.low %v5354_v52, %v4591_v61  ;;  %v2496_v58 = vcombine.low %v4476_v43, %v4641_v44  ;;  %v1276_v45 = vrot.slane %v1269_v49, %v4374_v37  ;;  %v1284_v24 = vrot.slane %v1277_v48, %v4374_v37  ;;  %v5359_v49 = vld [vmem:[#allocation36_spill] sm:$0xff] }
 0x1ff   : > { %v1509_v20 = vcombine.low %v4650_v5, %v980_v33  ;;  %v1605_v2 = vcombine.low %v4636_v26, %v966_v1  ;;  %v2613_v8 = vrot.slane %v2599_v40, %v5301_v7  ;;  %v1597_v10 = vcombine.low %v5355_v54, %v4572_v9  ;;  %v5367_v54 = vld [vmem:[#allocation49_spill] sm:$0xff] }
 0x200   : > { %2765 = vperm.xlu0 %3284, %v2376_v32   ;;  %2741 = vperm.xlu1 %3285, %v2240_v34   ;;  %v2259_v13 = vcombine.low %v1572_v6, %v1580_v16  ;;  %v2393_v26 = vcombine.low %v4601_v59, %v2392_v38  ;;  %v1500_v1 = vrot.slane %v1493_v28, %v4374_v37 }
 0x201   : > { %v1516_v61 = vrot.slane %v1509_v20, %v4374_v37  ;;  %v2606_v43 = vrot.slane %v2598_v47, %v5301_v7  ;;  %v2511_v44 = vrot.slane %v2497_v14, %v5301_v7  ;;  %v2257_v32 = vcombine.low %v4528_v36, %v2256_v39  ;;  %v5362_v39 = vld [vmem:[#allocation69_spill] sm:$0xff]  ;;  %v5363_v14 = vld [vmem:[#allocation43_spill] sm:$0xff] }
 0x202   : > { %v994_v63 = vpop.permute.xlu0 %993  ;;  %v4708_v5 = vpop.permute.xlu1 %707  ;;  %v2616_v41 = vcombine.low %v1284_v24, %v1292_v62  ;;  %v1508_v15 = vrot.slane %v1501_v35, %v4374_v37  ;;  %v1612_v9 = vrot.slane %v1605_v2, %v4374_v37  ;;  %v2504_v59 = vrot.slane %v2496_v58, %v5301_v7  ;;  %v5364_v2 = vld [vmem:[#allocation25_spill] sm:$0xff]  ;;  %v5365_v58 = vld [vmem:[#allocation10_spill] sm:$0xff] }
 0x203   : > { %v1413_v0 = vcombine.low %v4662_v53, %v994_v63  ;;  %v2615_v28 = vcombine.low %v4502_v56, %v1276_v45  ;;  %v1397_v31 = vcombine.low %v5357_v42, %v5356_v17  ;;  %v2614_v50 = vcombine.low %v2606_v43, %v2613_v8  ;;  %v5366_v8 = vld [vmem:[#allocation74_spill] sm:$0xff]  ;;  %v5369_v43 = vld [vmem:[#allocation12_spill] sm:$0xff] }
 0x204   : > { %2786 = vperm.xlu0 %3284, %v2495_v19   ;;  %2783 = vperm.xlu1 %3285, %v2478_v11   ;;  %v1604_v36 = vrot.slane %v1597_v10, %v4374_v37  ;;  %v1405_v33 = vcombine.low %v4538_v57, %v4606_v3  ;;  %v2273_v34 = vrot.slane %v2259_v13, %v5301_v7  ;;  %v5372_v42 = vld [vmem:[#allocation98_spill] sm:$0xff] }
 0x205   : > { %v2514_v23 = vcombine.low %v1508_v15, %v1516_v61  ;;  %v5358_v51 = vcombine.low %v3602_v25, %v3817_v4  ;;  %v1389_v29 = vcombine.low %v5360_v21, %v5359_v49  ;;  %v5361_v27 = vcombine.low %v4417_v22, %v4515_v60  ;;  %v5371_v15 = vld [vmem:[#allocation56_spill] sm:$0xff] }
 0x206   : > { %v4718_v12 = vpop.permute.xlu0 %759  ;;  %v4728_v30 = vpop.permute.xlu1 %775  ;;  %v2513_v3 = vcombine.low %v4489_v55, %v1500_v1  ;;  %v2630_v57 = vrot.slane %v2616_v41, %v5301_v7  ;;  %v2395_v40 = vcombine.low %v1604_v36, %v1612_v9  ;;  %v1420_v38 = vrot.slane %v1413_v0, %v4374_v37  ;;  %v5368_v1 = vld [vmem:[#allocation28_spill] sm:$0xff]  ;;  %v5370_v41 = vld [vmem:[#allocation81_spill] sm:$0xff]  ;;  %v5374_v36 = vld [vmem:[#allocation15_spill] sm:$0xff] }
 0x207   : > { %v1588_v56 = vrot.slane %v5358_v51, %v4374_v37  ;;  %v2266_v48 = vrot.slane %v5361_v27, %v5301_v7  ;;  %v2512_v25 = vcombine.low %v2504_v59, %v2511_v44  ;;  %v1404_v20 = vrot.slane %v1397_v31, %v4374_v37  ;;  %v5375_v51 = vld [vmem:[#allocation88_spill] sm:$0xff]  ;;  %v5377_v27 = vld [vmem:[#allocation37_spill] sm:$0xff] }
 0x208   : > { %2768 = vperm.xlu0 %3284, %v2393_v26   ;;  %2744 = vperm.xlu1 %3285, %v2257_v32   ;;  %v2623_v63 = vrot.slane %v2615_v28, %v5301_v7  ;;  %v1412_v22 = vrot.slane %v1405_v33, %v4374_v37  ;;  %v2528_v60 = vrot.slane %v2514_v23, %v5301_v7 }
 0x209   : > { %v2394_v4 = vcombine.low %v1588_v56, %v4580_v46  ;;  %v2274_v19 = vcombine.low %v2266_v48, %v2273_v34  ;;  %v1396_v47 = vrot.slane %v1389_v29, %v4374_v37  ;;  %v1685_v11 = vcombine.low %v5363_v14, %v5362_v39  ;;  %v5376_v56 = vld [vmem:[#allocation63_spill] sm:$0xff]  ;;  %v5378_v48 = vld [vmem:[#allocation20_spill] sm:$0xff] }
 0x20a   : > { %v4738_v53 = vpop.permute.xlu0 %789  ;;  %v4753_v16 = vpop.permute.xlu1 %803  ;;  %v2521_v62 = vrot.slane %v2513_v3, %v5301_v7  ;;  %v2409_v46 = vrot.slane %v2395_v40, %v5301_v7  ;;  %v2633_v6 = vcombine.low %v1412_v22, %v1420_v38  ;;  %v2631_v35 = vcombine.low %v2623_v63, %v2630_v57  ;;  %v5379_v57 = vld [vmem:[#allocation106_spill] sm:$0xff] }
 0x20b   : > { %v1677_v45 = vcombine.low %v5365_v58, %v5364_v2  ;;  %v2402_v24 = vrot.slane %v2394_v4, %v5301_v7  ;;  %v1717_v10 = vcombine.low %v5367_v54, %v5366_v8  ;;  %v2632_v13 = vcombine.low %v1396_v47, %v1404_v20  ;;  %v5380_v4 = vld [vmem:[#allocation113_spill] sm:$0xff] }
 0x20c   : > { %2807 = vperm.xlu0 %3284, %v2614_v50   ;;  %2789 = vperm.xlu1 %3285, %v2512_v25   ;;  %v2529_v26 = vcombine.low %v2521_v62, %v2528_v60  ;;  %v1709_v44 = vcombine.low %v5369_v43, %v5368_v1  ;;  %v1692_v32 = vrot.slane %v1685_v11, %v4374_v37  ;;  %v5373_v50 = vld [vmem:[#allocation31_spill] sm:$0xff] }
 0x20d   : > { %v1621_v9 = vcombine.low %v5371_v15, %v5370_v41  ;;  %v2647_v0 = vrot.slane %v2633_v6, %v5301_v7  ;;  %v2410_v28 = vcombine.low %v2402_v24, %v2409_v46  ;;  %v1684_v17 = vrot.slane %v1677_v45, %v4374_v37 }
 0x20e   : > { %v856_v55 = vpop.permute.xlu0 %855  ;;  %v872_v52 = vpop.permute.xlu1 %871  ;;  %v1693_v31 = vcombine.low %v5372_v42, %v4718_v12  ;;  %v1613_v33 = vcombine.low %v5374_v36, %v5373_v50  ;;  %v1724_v34 = vrot.slane %v1717_v10, %v4374_v37  ;;  %v2640_v23 = vrot.slane %v2632_v13, %v5301_v7 }
 0x20f   : > { %v1525_v49 = vcombine.low %v5376_v56, %v5375_v51  ;;  %v1716_v29 = vrot.slane %v1709_v44, %v4374_v37  ;;  %v1517_v3 = vcombine.low %v5378_v48, %v5377_v27  ;;  %v1725_v12 = vcombine.low %v5379_v57, %v4728_v30  ;;  %v5385_v27 = vld [vmem:[#allocation75_spill] sm:$0xff]  ;;  %v5386_v48 = vld [vmem:[#allocation50_spill] sm:$0xff] }
 0x210   : > { %2747 = vperm.xlu0 %3284, %v2274_v19   ;;  %2810 = vperm.xlu1 %3285, %v2631_v35   ;;  %v2275_v38 = vcombine.low %v1684_v17, %v1692_v32  ;;  %v1628_v25 = vrot.slane %v1621_v9, %v4374_v37  ;;  %v1629_v20 = vcombine.low %v5380_v4, %v4738_v53  ;;  %v5389_v4 = vld [vmem:[#allocation82_spill] sm:$0xff] }
 0x211   : > { %v2648_v22 = vcombine.low %v2640_v23, %v2647_v0  ;;  %v1700_v60 = vrot.slane %v1693_v31, %v4374_v37  ;;  %v1620_v39 = vrot.slane %v1613_v33, %v4374_v37  ;;  %v2411_v14 = vcombine.low %v1716_v29, %v1724_v34  ;;  %v5381_v34 = vld [vmem:[#allocation70_spill] sm:$0xff]  ;;  %v5382_v23 = vld [vmem:[#allocation44_spill] sm:$0xff] }
 0x212   : > { %v886_v61 = vpop.permute.xlu0 %885  ;;  %v900_v59 = vpop.permute.xlu1 %899  ;;  %v1532_v11 = vrot.slane %v1525_v49, %v4374_v37  ;;  %v1533_v30 = vcombine.low %v4708_v5, %v4753_v16  ;;  %v1732_v62 = vrot.slane %v1725_v12, %v4374_v37  ;;  %v1524_v35 = vrot.slane %v1517_v3, %v4374_v37  ;;  %v5383_v49 = vld [vmem:[#allocation26_spill] sm:$0xff]  ;;  %v5387_v12 = vld [vmem:[#allocation29_spill] sm:$0xff] }
 0x213   : > { %v2530_v2 = vcombine.low %v1620_v39, %v1628_v25  ;;  %v1636_v58 = vrot.slane %v1629_v20, %v4374_v37  ;;  %v2419_v54 = vrot.slane %v2411_v14, %v5301_v7  ;;  %v1813_v51 = vcombine.low %v5382_v23, %v5381_v34  ;;  %v5390_v20 = vld [vmem:[#allocation57_spill] sm:$0xff]  ;;  %v5392_v39 = vld [vmem:[#allocation32_spill] sm:$0xff] }
 0x214   : > { %2792 = vperm.xlu0 %3284, %v2529_v26   ;;  %2771 = vperm.xlu1 %3285, %v2410_v28   ;;  %v2649_v10 = vcombine.low %v1524_v35, %v1532_v11  ;;  %v1540_v13 = vrot.slane %v1533_v30, %v4374_v37  ;;  %v1845_v3 = vcombine.low %v5386_v48, %v5385_v27  ;;  %v5393_v14 = vld [vmem:[#allocation16_spill] sm:$0xff]  ;;  %v5396_v35 = vld [vmem:[#allocation107_spill] sm:$0xff] }
 0x215   : > { %v2538_v41 = vrot.slane %v2530_v2, %v5301_v7  ;;  %v1820_v25 = vrot.slane %v1813_v51, %v4374_v37  ;;  %v1741_v11 = vcombine.low %v5393_v14, %v5392_v39  ;;  %v5400_v14 = vld [vmem:[#allocation71_spill] sm:$0xff] }
 0x216   : > { %v952_v21 = vpop.permute.xlu0 %951  ;;  %v968_v63 = vpop.permute.xlu1 %967  ;;  %v2657_v28 = vrot.slane %v2649_v10, %v5301_v7  ;;  %v1852_v30 = vrot.slane %v1845_v3, %v4374_v37 }
 0x217   : > { %v1701_v40 = vcombine.low %v856_v55, %v952_v21  ;;  %v1733_v47 = vcombine.low %v872_v52, %v968_v63  ;;  %v2283_v52 = vrot.slane %v2275_v38, %v5301_v7  ;;  %v5384_v21 = vld [vmem:[#allocation11_spill] sm:$0xff]  ;;  %v1749_v63 = vcombine.low %v5390_v20, %v5389_v4 }
 0x218   : > { %2813 = vperm.xlu1 %3285, %v2648_v22   ;;  %v1805_v29 = vcombine.low %v5384_v21, %v5383_v49 }
 0x219   : > { %v1708_v19 = vrot.slane %v1701_v40, %v4374_v37  ;;  %v1740_v46 = vrot.slane %v1733_v47, %v4374_v37  ;;  %v5388_v40 = vld [vmem:[#allocation13_spill] sm:$0xff] }
 0x21a   : > { %v982_v55 = vpop.permute.xlu0 %981  ;;  %v996_v45 = vpop.permute.xlu1 %995  ;;  %v1837_v38 = vcombine.low %v5388_v40, %v5387_v12  ;;  %v1812_v47 = vrot.slane %v1805_v29, %v4374_v37 }
 0x21b   : > { %v2276_v53 = vcombine.low %v1700_v60, %v1708_v19  ;;  %v1637_v6 = vcombine.low %v886_v61, %v982_v55  ;;  %v2412_v8 = vcombine.low %v1732_v62, %v1740_v46  ;;  %v1541_v16 = vcombine.low %v900_v59, %v996_v45  ;;  %v5391_v60 = vld [vmem:[#allocation99_spill] sm:$0xff]  ;;  %v5394_v55 = vld [vmem:[#allocation89_spill] sm:$0xff]  ;;  %v5395_v62 = vld [vmem:[#allocation64_spill] sm:$0xff] }
 0x21c   : > { %v5398_v45 = vld [vmem:[#allocation21_spill] sm:$0xff] }
 0x21d   : > { %v2290_v24 = vrot.slane %v2276_v53, %v5301_v7  ;;  %v1644_v5 = vrot.slane %v1637_v6, %v4374_v37  ;;  %v2426_v26 = vrot.slane %v2412_v8, %v5301_v7  ;;  %v1548_v43 = vrot.slane %v1541_v16, %v4374_v37  ;;  %v5399_v16 = vld [vmem:[#allocation114_spill] sm:$0xff] }
 0x21e   : > { %v4808_v61 = vpop.permute.xlu0 %709  ;;  %v762_v32 = vpop.permute.xlu1 %761  ;;  %v1653_v53 = vcombine.low %v5395_v62, %v5394_v55  ;;  %v1844_v6 = vrot.slane %v1837_v38, %v4374_v37  ;;  %v2292_v8 = vcombine.low %v1812_v47, %v1820_v25  ;;  %v5402_v62 = vld [vmem:[#allocation27_spill] sm:$0xff] }
 0x21f   : > { %v2531_v1 = vcombine.low %v1636_v58, %v1644_v5  ;;  %v2291_v44 = vcombine.low %v2283_v52, %v2290_v24  ;;  %v2650_v9 = vcombine.low %v1540_v13, %v1548_v43  ;;  %v2427_v0 = vcombine.low %v2419_v54, %v2426_v26  ;;  %v5397_v58 = vld [vmem:[#allocation38_spill] sm:$0xff] }
 0x220   : > { %v1821_v19 = vcombine.low %v5391_v60, %v762_v32  ;;  %v1645_v24 = vcombine.low %v5398_v45, %v5397_v58  ;;  %v1756_v5 = vrot.slane %v1749_v63, %v4374_v37  ;;  %v1748_v43 = vrot.slane %v1741_v11, %v4374_v37  ;;  %v5401_v11 = vld [vmem:[#allocation45_spill] sm:$0xff]  ;;  %v5406_v58 = vld [vmem:[#allocation14_spill] sm:$0xff] }
 0x221   : > { %v2545_v15 = vrot.slane %v2531_v1, %v5301_v7  ;;  %2750 = vperm.xlu0 %3284, %v2291_v44   ;;  %v2664_v17 = vrot.slane %v2650_v9, %v5301_v7  ;;  %2774 = vperm.xlu1 %3285, %v2427_v0   ;;  %v2428_v44 = vcombine.low %v1844_v6, %v1852_v30  ;;  %v5404_v6 = vld [vmem:[#allocation51_spill] sm:$0xff] }
 0x222   : > { %v778_v59 = vpop.permute.xlu0 %777  ;;  %v792_v31 = vpop.permute.xlu1 %791  ;;  %v1828_v13 = vrot.slane %v1821_v19, %v4374_v37  ;;  %v1660_v32 = vrot.slane %v1653_v53, %v4374_v37  ;;  %v1941_v30 = vcombine.low %v5401_v11, %v5400_v14  ;;  %v1933_v53 = vcombine.low %v3576_v18, %v5402_v62 }
 0x223   : > { %v2546_v42 = vcombine.low %v2538_v41, %v2545_v15  ;;  %v2665_v50 = vcombine.low %v2657_v28, %v2664_v17  ;;  %v1853_v52 = vcombine.low %v5396_v35, %v778_v59  ;;  %v1757_v54 = vcombine.low %v5399_v16, %v792_v31 }
 0x224   : > { %v1652_v17 = vrot.slane %v1645_v24, %v4374_v37  ;;  %v2547_v31 = vcombine.low %v1748_v43, %v1756_v5  ;;  %v2436_v51 = vrot.slane %v2428_v44, %v5301_v7  ;;  %v1948_v24 = vrot.slane %v1941_v30, %v4374_v37  ;;  %v5408_v5 = vld [vmem:[#allocation58_spill] sm:$0xff]  ;;  %v5411_v43 = vld [vmem:[#allocation17_spill] sm:$0xff] }
 0x225   : > { %2795 = vperm.xlu0 %3284, %v2546_v42   ;;  %2816 = vperm.xlu1 %3285, %v2665_v50   ;;  %v1860_v9 = vrot.slane %v1853_v52, %v4374_v37  ;;  %v2300_v42 = vrot.slane %v2292_v8, %v5301_v7  ;;  %v1764_v50 = vrot.slane %v1757_v54, %v4374_v37  ;;  %v5407_v8 = vld [vmem:[#allocation83_spill] sm:$0xff] }
 0x226   : > { %v806_v36 = vpop.permute.xlu0 %805  ;;  %v858_v33 = vpop.permute.xlu1 %857  ;;  %v2555_v12 = vrot.slane %v2547_v31, %v5301_v7  ;;  %v1877_v16 = vcombine.low %v5408_v5, %v5407_v8  ;;  %v5416_v31 = vld [vmem:[#allocation22_spill] sm:$0xff] }
 0x227   : > { %v1661_v41 = vcombine.low %v4808_v61, %v806_v36 }
 0x229   : > { %v1668_v49 = vrot.slane %v1661_v41, %v4374_v37  ;;  %v5413_v41 = vld [vmem:[#allocation65_spill] sm:$0xff] }
 0x22a   : > { %v874_v56 = vpop.permute.xlu0 %873  ;;  %v888_v57 = vpop.permute.xlu1 %887 }
 0x22e   : > { %v902_v22 = vpop.permute.xlu0 %901  ;;  %v954_v46 = vpop.permute.xlu1 %953 }
 0x22f   : > { %v1829_v2 = vcombine.low %v858_v33, %v954_v46  ;;  %v5403_v46 = vld [vmem:[#allocation76_spill] sm:$0xff] }
 0x230   : > { %v1973_v35 = vcombine.low %v5404_v6, %v5403_v46 }
 0x231   : > { %v1836_v26 = vrot.slane %v1829_v2, %v4374_v37  ;;  %v5405_v2 = vld [vmem:[#allocation30_spill] sm:$0xff] }
 0x232   : > { %v970_v10 = vpop.permute.xlu0 %969  ;;  %v984_v15 = vpop.permute.xlu1 %983  ;;  %v1965_v45 = vcombine.low %v5406_v58, %v5405_v2  ;;  %v1980_v44 = vrot.slane %v1973_v35, %v4374_v37 }
 0x233   : > { %v1861_v1 = vcombine.low %v874_v56, %v970_v10  ;;  %v2293_v0 = vcombine.low %v1828_v13, %v1836_v26  ;;  %v1765_v28 = vcombine.low %v888_v57, %v984_v15  ;;  %v2666_v56 = vcombine.low %v1652_v17, %v1660_v32  ;;  %v5409_v10 = vld [vmem:[#allocation100_spill] sm:$0xff]  ;;  %v5412_v32 = vld [vmem:[#allocation90_spill] sm:$0xff] }
 0x234   : > { %v1940_v26 = vrot.slane %v1933_v53, %v4374_v37  ;;  %v1781_v15 = vcombine.low %v5413_v41, %v5412_v32  ;;  %v5422_v41 = vld [vmem:[#allocation91_spill] sm:$0xff] }
 0x235   : > { %v1868_v59 = vrot.slane %v1861_v1, %v4374_v37  ;;  %v2307_v34 = vrot.slane %v2293_v0, %v5301_v7  ;;  %v1772_v61 = vrot.slane %v1765_v28, %v4374_v37  ;;  %v2674_v20 = vrot.slane %v2666_v56, %v5301_v7  ;;  %v5410_v1 = vld [vmem:[#allocation33_spill] sm:$0xff] }
 0x236   : > { %v998_v33 = vpop.permute.xlu0 %997  ;;  %v4854_v21 = vpop.permute.xlu1 %711  ;;  %v1869_v18 = vcombine.low %v5411_v43, %v5410_v1  ;;  %v1972_v0 = vrot.slane %v1965_v45, %v4374_v37 }
 0x237   : > { %v2429_v23 = vcombine.low %v1860_v9, %v1868_v59  ;;  %v1669_v36 = vcombine.low %v902_v22, %v998_v33  ;;  %v2548_v27 = vcombine.low %v1764_v50, %v1772_v61  ;;  %v2308_v3 = vcombine.low %v2300_v42, %v2307_v34  ;;  %v5414_v59 = vld [vmem:[#allocation108_spill] sm:$0xff]  ;;  %v5415_v42 = vld [vmem:[#allocation39_spill] sm:$0xff] }
 0x238   : > { %v1773_v50 = vcombine.low %v5416_v31, %v5415_v42  ;;  %v2309_v33 = vcombine.low %v1940_v26, %v1948_v24  ;;  %v1884_v34 = vrot.slane %v1877_v16, %v4374_v37 }
 0x239   : > { %v2443_v29 = vrot.slane %v2429_v23, %v5301_v7  ;;  %v1676_v48 = vrot.slane %v1669_v36, %v4374_v37  ;;  %v2562_v40 = vrot.slane %v2548_v27, %v5301_v7  ;;  %2753 = vperm.xlu0 %3284, %v2308_v3   ;;  %v5417_v23 = vld [vmem:[#allocation115_spill] sm:$0xff]  ;;  %v2445_v27 = vcombine.low %v1972_v0, %v1980_v44  ;;  %v5421_v44 = vld [vmem:[#allocation18_spill] sm:$0xff]  ;;  %v5424_v0 = vld [vmem:[#allocation40_spill] sm:$0xff] }
 0x23a   : > { %v764_v57 = vpop.permute.xlu0 %763  ;;  %v780_v4 = vpop.permute.xlu1 %779 }
 0x23b   : > { %v2667_v38 = vcombine.low %v1668_v49, %v1676_v48  ;;  %v2444_v25 = vcombine.low %v2436_v51, %v2443_v29  ;;  %v2563_v22 = vcombine.low %v2555_v12, %v2562_v40  ;;  %v1949_v13 = vcombine.low %v5409_v10, %v764_v57  ;;  %v5418_v10 = vld [vmem:[#allocation84_spill] sm:$0xff] }
 0x23c   : > { %v1981_v28 = vcombine.low %v5414_v59, %v780_v4  ;;  %v1876_v29 = vrot.slane %v1869_v18, %v4374_v37  ;;  %v1788_v48 = vrot.slane %v1781_v15, %v4374_v37  ;;  %v1780_v4 = vrot.slane %v1773_v50, %v4374_v37  ;;  %v5420_v18 = vld [vmem:[#allocation34_spill] sm:$0xff]  ;;  %v5425_v59 = vld [vmem:[#allocation23_spill] sm:$0xff] }
 0x23d   : > { %v2681_v63 = vrot.slane %v2667_v38, %v5301_v7  ;;  %2777 = vperm.xlu1 %3285, %v2444_v25   ;;  %2798 = vperm.xlu0 %3284, %v2563_v22   ;;  %v1956_v51 = vrot.slane %v1949_v13, %v4374_v37  ;;  %v2453_v14 = vrot.slane %v2445_v27, %v5301_v7  ;;  %v5419_v13 = vld [vmem:[#allocation59_spill] sm:$0xff]  ;;  %v5423_v15 = vld [vmem:[#allocation66_spill] sm:$0xff] }
 0x23e   : > { %v794_v60 = vpop.permute.xlu0 %793  ;;  %v808_v47 = vpop.permute.xlu1 %807  ;;  %v1988_v12 = vrot.slane %v1981_v28, %v4374_v37  ;;  %v2683_v11 = vcombine.low %v1780_v4, %v1788_v48  ;;  %v2005_v26 = vcombine.low %v5419_v13, %v5418_v10  ;;  %v1997_v32 = vcombine.low %v5421_v44, %v5420_v18  ;;  %v5426_v48 = vld [vmem:[#allocation92_spill] sm:$0xff] }
 0x23f   : > { %v2682_v19 = vcombine.low %v2674_v20, %v2681_v63  ;;  %v1885_v61 = vcombine.low %v5417_v23, %v794_v60  ;;  %v1789_v3 = vcombine.low %v4854_v21, %v808_v47  ;;  %v2317_v20 = vrot.slane %v2309_v33, %v5301_v7 }
 0x240   : > { %v2564_v63 = vcombine.low %v1876_v29, %v1884_v34  ;;  %v2691_v8 = vrot.slane %v2683_v11, %v5301_v7  ;;  %v1901_v28 = vcombine.low %v5425_v59, %v5424_v0  ;;  %v2012_v42 = vrot.slane %v2005_v26, %v4374_v37 }
 0x241   : > { %2819 = vperm.xlu1 %3285, %v2682_v19   ;;  %v1892_v22 = vrot.slane %v1885_v61, %v4374_v37  ;;  %v1796_v30 = vrot.slane %v1789_v3, %v4374_v37  ;;  %v2004_v33 = vrot.slane %v1997_v32, %v4374_v37  ;;  %v5427_v3 = vld [vmem:[#allocation67_spill] sm:$0xff] }
 0x242   : > { %v860_v39 = vpop.permute.xlu0 %859  ;;  %v876_v55 = vpop.permute.xlu1 %875 }
 0x246   : > { %v890_v52 = vpop.permute.xlu0 %889  ;;  %v904_v54 = vpop.permute.xlu1 %903 }
 0x24a   : > { %v956_v9 = vpop.permute.xlu0 %955  ;;  %v972_v36 = vpop.permute.xlu1 %971 }
 0x24b   : > { %v1957_v17 = vcombine.low %v860_v39, %v956_v9  ;;  %v1989_v49 = vcombine.low %v876_v55, %v972_v36  ;;  %v1909_v9 = vcombine.low %v5423_v15, %v5422_v41  ;;  %v1908_v36 = vrot.slane %v1901_v28, %v4374_v37 }
 0x24d   : > { %v1964_v56 = vrot.slane %v1957_v17, %v4374_v37  ;;  %v1996_v38 = vrot.slane %v1989_v49, %v4374_v37  ;;  %v1916_v34 = vrot.slane %v1909_v9, %v4374_v37 }
 0x24e   : > { %v986_v57 = vpop.permute.xlu0 %985  ;;  %v1000_v60 = vpop.permute.xlu1 %999 }
 0x24f   : > { %v2310_v40 = vcombine.low %v1956_v51, %v1964_v56  ;;  %v1893_v25 = vcombine.low %v890_v52, %v986_v57  ;;  %v2446_v39 = vcombine.low %v1988_v12, %v1996_v38  ;;  %v1797_v47 = vcombine.low %v904_v54, %v1000_v60 }
 0x250   : > { %v2572_v52 = vrot.slane %v2564_v63, %v5301_v7  ;;  %v2581_v56 = vcombine.low %v2004_v33, %v2012_v42  ;;  %v2037_v57 = vcombine.low %v5427_v3, %v5426_v48  ;;  %v5428_v63 = vld [vmem:[#allocation41_spill] sm:$0xff]  ;;  %v5431_v48 = vld [vmem:[#allocation8_spill] sm:$0xff] }
 0x251   : > { %v2324_v19 = vrot.slane %v2310_v40, %v5301_v7  ;;  %v1900_v21 = vrot.slane %v1893_v25, %v4374_v37  ;;  %v2460_v62 = vrot.slane %v2446_v39, %v5301_v7  ;;  %v1804_v46 = vrot.slane %v1797_v47, %v4374_v37 }
 0x252   : > { %v700_v55 = vpop.permute.xlu0 %699  ;;  %v714_v35 = vpop.permute.xlu1 %713  ;;  %v2700_v40 = vcombine.low %v1908_v36, %v1916_v34  ;;  %v2044_v47 = vrot.slane %v2037_v57, %v4374_v37  ;;  %v5430_v34 = vlaneseq }
 0x253   : > { %v2565_v53 = vcombine.low %v1892_v22, %v1900_v21  ;;  %v2325_v6 = vcombine.low %v2317_v20, %v2324_v19  ;;  %v2684_v58 = vcombine.low %v1796_v30, %v1804_v46  ;;  %v2461_v45 = vcombine.low %v2453_v14, %v2460_v62  ;;  %v5429_v22 = vld [vmem:[#allocation24_spill] sm:$0xff] }
 0x254   : > { %v2029_v60 = vcombine.low %v5429_v22, %v5428_v63  ;;  %v2589_v19 = vrot.slane %v2581_v56, %v5301_v7  ;;  %v2708_v11 = vrot.slane %v2700_v40, %v5301_v7 }
 0x255   : > { %v2579_v2 = vrot.slane %v2565_v53, %v5301_v7  ;;  %2756 = vperm.xlu0 %3284, %v2325_v6   ;;  %v2698_v5 = vrot.slane %v2684_v58, %v5301_v7  ;;  %2780 = vperm.xlu1 %3285, %v2461_v45  }
 0x256   : > { %v796_v24 = vpop.permute.xlu0 %795  ;;  %v810_v54 = vpop.permute.xlu1 %809  ;;  %v2036_v46 = vrot.slane %v2029_v60, %v4374_v37 }
 0x257   : > { %v2580_v16 = vcombine.low %v2572_v52, %v2579_v2  ;;  %v2699_v1 = vcombine.low %v2691_v8, %v2698_v5  ;;  %v2013_v31 = vcombine.low %v700_v55, %v796_v24  ;;  %v1917_v23 = vcombine.low %v714_v35, %v810_v54 }
 0x258   : > { %v2717_v52 = vcombine.low %v2036_v46, %v2044_v47  ;;  %v3417_v5 = vmov 0.0  }
 0x259   : > { %2801 = vperm.xlu0 %3284, %v2580_v16   ;;  %2822 = vperm.xlu1 %3285, %v2699_v1   ;;  %v2020_v49 = vrot.slane %v2013_v31, %v4374_v37  ;;  %v1924_v38 = vrot.slane %v1917_v23, %v4374_v37  ;;  %v2831_v23 = vand.u32 127, %v5430_v34 }
 0x25a   : > { %v892_v43 = vpop.permute.xlu0 %891  ;;  %v906_v17 = vpop.permute.xlu1 %905  ;;  %v2725_v24 = vrot.slane %v2717_v52, %v5301_v7  ;;  %3203 = vmatprep.subr.mxu0 %v3417_v5  ;;  %3205 = vmatprep.mubr.msk.f32.mxu0 %vm3418_vm0, %v3417_v5 }
 0x25b   : > { %v2836_v36 = vadd.s32 4294967288, %v2831_v23  ;;  %v2834_v3 = vsub.s32 %v2831_v23, %v5431_v48  ;;  %v2871_v63 = vadd.s32 4294967248, %v2831_v23 }
 0x25d   : > { %v2839_v57 = vsub.s32 %v2836_v36, %v5431_v48 }
 0x25e   : > { %v988_v50 = vpop.permute.xlu0 %987  ;;  %v1002_v51 = vpop.permute.xlu1 %1001 }
 0x25f   : > { %v2021_v61 = vcombine.low %v892_v43, %v988_v50  ;;  %v1925_v27 = vcombine.low %v906_v17, %v1002_v51  ;;  %v2843_v51 = vadd.s32 4294967280, %v2831_v23 }
 0x261   : > { %v2028_v29 = vrot.slane %v2021_v61, %v4374_v37  ;;  %v1932_v4 = vrot.slane %v1925_v27, %v4374_v37  ;;  %v4986_v40 = vsub.s32 %v2843_v51, %v5431_v48 }
 0x262   : > { %v716_v12 = vpop.permute.xlu0 %715  ;;  %v812_v20 = vpop.permute.xlu1 %811 }
 0x263   : > { %v2582_v25 = vcombine.low %v2020_v49, %v2028_v29  ;;  %v2701_v21 = vcombine.low %v1924_v38, %v1932_v4  ;;  %v2045_v55 = vcombine.low %v716_v12, %v812_v20  ;;  %v2850_v49 = vadd.s32 4294967272, %v2831_v23 }
 0x264   : > { %v2857_v29 = vadd.s32 4294967264, %v2831_v23  ;;  %v2864_v12 = vadd.s32 4294967256, %v2831_v23 }
 0x265   : > { %v2596_v39 = vrot.slane %v2582_v25, %v5301_v7  ;;  %v2715_v30 = vrot.slane %v2701_v21, %v5301_v7  ;;  %v2052_v2 = vrot.slane %v2045_v55, %v4374_v37  ;;  %v4991_v4 = vsub.s32 %v2850_v49, %v5431_v48 }
 0x266   : > { %v908_v14 = vpop.permute.xlu0 %907  ;;  %v1004_v53 = vpop.permute.xlu1 %1003  ;;  %v4994_v20 = vsub.s32 %v2857_v29, %v5431_v48  ;;  %v2878_v21 = vadd.s32 4294967240, %v2831_v23 }
 0x267   : > { %v2597_v62 = vcombine.low %v2589_v19, %v2596_v39  ;;  %v2053_v6 = vcombine.low %v908_v14, %v1004_v53  ;;  %v2716_v35 = vcombine.low %v2708_v11, %v2715_v30  ;;  %v5000_v39 = vsub.s32 %v2864_v12, %v5431_v48 }
 0x269   : > { %2804 = vperm.xlu0 %3284, %v2597_v62   ;;  %v2060_v58 = vrot.slane %v2053_v6, %v4374_v37  ;;  %2825 = vperm.xlu1 %3285, %v2716_v35  }
 0x26b   : > { %v2718_v45 = vcombine.low %v2052_v2, %v2060_v58  ;;  %v2874_v2 = vsub.s32 %v2871_v63, %v5431_v48 }
 0x26d   : > { %v2732_v8 = vrot.slane %v2718_v45, %v5301_v7 }
 0x26f   : > { %v2733_v16 = vcombine.low %v2725_v24, %v2732_v8  ;;  %v2881_v8 = vsub.s32 %v2878_v21, %v5431_v48 }
 0x271   : > { %2828 = vperm.xlu0 %3284, %v2733_v16  }
 0x273   : > { %v4936_v54 = vpop.permute.xlu1 %2738  ;;  %v4938_v10 = vpop.permute.xlu0 %2735 }
 0x274   : > { %v2840_v60 = vrot.slane %v4936_v54, %v2839_v57  ;;  %v2835_v47 = vrot.slane %v4938_v10, %v2834_v3 }
 0x276   : > { %v2842_v45 = vsel %vm2841_vm1, %v2840_v60, %v2835_v47 }
 0x277   : > { %v2760_v13 = vpop.permute.xlu1 %2759  ;;  %v2763_v26 = vpop.permute.xlu0 %2762 }
 0x278   : > { %v2888_v25 = vrot.slane %v2760_v13, %v2834_v3  ;;  %v2892_v19 = vrot.slane %v2763_v26, %v2839_v57 }
 0x27a   : > { %v2893_v55 = vsel %vm2841_vm1, %v2892_v19, %v2888_v25 }
 0x27b   : > { %v4940_v1 = vpop.permute.xlu1 %2741  ;;  %v4942_v37 = vpop.permute.xlu0 %2765 }
 0x27c   : > { %v2897_v14 = vrot.slane %v4942_v37, %v4986_v40  ;;  %v2847_v11 = vrot.slane %v4940_v1, %v4986_v40 }
 0x27e   : > { %v2898_v5 = vsel %vm2848_vm2, %v2897_v14, %v2893_v55  ;;  %v2849_v16 = vsel %vm2848_vm2, %v2847_v11, %v2842_v45  ;;  %v2061_v11 = vld [vmem:[%s5130_s1] sm:$0xff] }
 0x27f   : > { %v4944_v43 = vpop.permute.xlu1 %2783  ;;  %v4946_v18 = vpop.permute.xlu0 %2786 }
 0x280   : > { %v2927_v30 = vrot.slane %v4944_v43, %v2834_v3  ;;  %v2931_v6 = vrot.slane %v4946_v18, %v2839_v57 }
 0x282   : > { %v2932_v54 = vsel %vm2841_vm1, %v2931_v6, %v2927_v30 }
 0x283   : > { %v4948_v7 = vpop.permute.xlu1 %2744  ;;  %v4950_v44 = vpop.permute.xlu0 %2768 }
 0x284   : > { %v2902_v62 = vrot.slane %v4950_v44, %v4991_v4  ;;  %v2854_v53 = vrot.slane %v4948_v7, %v4991_v4 }
 0x286   : > { %v2903_v26 = vsel %vm2855_vm3, %v2902_v62, %v2898_v5  ;;  %v2856_v1 = vsel %vm2855_vm3, %v2854_v53, %v2849_v16 }
 0x287   : > { %v4952_v32 = vpop.permute.xlu1 %2789  ;;  %v4954_v41 = vpop.permute.xlu0 %2807 }
 0x288   : > { %v2936_v46 = vrot.slane %v4952_v32, %v4986_v40  ;;  %v2966_v10 = vrot.slane %v4954_v41, %v2834_v3 }
 0x28a   : > { %v2937_v37 = vsel %vm2848_vm2, %v2936_v46, %v2932_v54 }
 0x28b   : > { %v4956_v15 = vpop.permute.xlu1 %2810  ;;  %v4958_v9 = vpop.permute.xlu0 %2747 }
 0x28c   : > { %v2861_v35 = vrot.slane %v4958_v9, %v4994_v20  ;;  %v2970_v52 = vrot.slane %v4956_v15, %v2839_v57 }
 0x28e   : > { %v2863_v18 = vsel %vm2862_vm4, %v2861_v35, %v2856_v1  ;;  %v2971_v7 = vsel %vm2841_vm1, %v2970_v52, %v2966_v10 }
 0x28f   : > { %v4960_v0 = vpop.permute.xlu1 %2771  ;;  %v4962_v59 = vpop.permute.xlu0 %2792 }
 0x290   : > { %v2941_v24 = vrot.slane %v4962_v59, %v4991_v4  ;;  %v2907_v43 = vrot.slane %v4960_v0, %v4994_v20 }
 0x292   : > { %v2942_v15 = vsel %vm2855_vm3, %v2941_v24, %v2937_v37  ;;  %v2908_v51 = vsel %vm2862_vm4, %v2907_v43, %v2903_v26 }
 0x293   : > { %v4964_v28 = vpop.permute.xlu1 %2813 }
 0x294   : > { %v2975_v9 = vrot.slane %v4964_v28, %v4986_v40 }
 0x296   : > { %v2976_v48 = vsel %vm2848_vm2, %v2975_v9, %v2971_v7 }
 0x29c   : > { %v4966_v17 = vpop.permute.xlu0 %2750  ;;  %v4968_v42 = vpop.permute.xlu1 %2774 }
 0x29d   : > { %v2912_v44 = vrot.slane %v4968_v42, %v5000_v39  ;;  %v2868_v34 = vrot.slane %v4966_v17, %v5000_v39 }
 0x2a0   : > { %v4970_v31 = vpop.permute.xlu0 %2795  ;;  %v4972_v50 = vpop.permute.xlu1 %2816 }
 0x2a1   : > { %v2946_v32 = vrot.slane %v4970_v31, %v4994_v20  ;;  %v2980_v42 = vrot.slane %v4972_v50, %v4991_v4 }
 0x2a3   : > { %v2947_v29 = vsel %vm2862_vm4, %v2946_v32, %v2942_v15 }
 0x2b4   : > { %v4974_v33 = vpop.permute.xlu0 %2753 }
 0x2b5   : > { %v2875_v49 = vrot.slane %v4974_v33, %v2874_v2  ;;  %v2870_v33 = vsel %vm2869_vm5, %v2868_v34, %v2863_v18 }
 0x2b7   : > { %v2877_v4 = vsel %vm2876_vm6, %v2875_v49, %v2870_v33 }
 0x2b8   : > { %v4977_v61 = vpop.permute.xlu1 %2777  ;;  %v4979_v56 = vpop.permute.xlu0 %2798 }
 0x2b9   : > { %v2917_v59 = vrot.slane %v4977_v61, %v2874_v2  ;;  %v2951_v0 = vrot.slane %v4979_v56, %v5000_v39  ;;  %v2913_v56 = vsel %vm2869_vm5, %v2912_v44, %v2908_v51 }
 0x2bb   : > { %v2918_v3 = vsel %vm2876_vm6, %v2917_v59, %v2913_v56  ;;  %v2952_v57 = vsel %vm2869_vm5, %v2951_v0, %v2947_v29 }
 0x2bc   : > { %v4981_v27 = vpop.permute.xlu1 %2819 }
 0x2bd   : > { %v2985_v28 = vrot.slane %v4981_v27, %v4994_v20  ;;  %v2981_v27 = vsel %vm2855_vm3, %v2980_v42, %v2976_v48 }
 0x2d0   : > { %v4988_v38 = vpop.permute.xlu0 %2756  ;;  %v4996_v22 = vpop.permute.xlu1 %2780 }
 0x2d1   : > { %v2922_v23 = vrot.slane %v4996_v22, %v2881_v8  ;;  %v2882_v17 = vrot.slane %v4988_v38, %v2881_v8  ;;  %v2986_v38 = vsel %vm2862_vm4, %v2985_v28, %v2981_v27 }
 0x2d3   : > { %v2923_v40 = vsel %vm2883_vm7, %v2922_v23, %v2918_v3  ;;  %v2884_v22 = vsel %vm2883_vm7, %v2882_v17, %v2877_v4 }
 0x2d4   : > { %v2802_v58 = vpop.permute.xlu0 %2801  ;;  %v2823_v13 = vpop.permute.xlu1 %2822  ;;  %v3003_v21 = vsel %vm3002_vm8, %v2923_v40, %v2884_v22 }
 0x2d5   : > { %v2956_v31 = vrot.slane %v2802_v58, %v2874_v2  ;;  %v2990_v50 = vrot.slane %v2823_v13, %v5000_v39 }
 0x2d7   : > { %v2957_v25 = vsel %vm2876_vm6, %v2956_v31, %v2952_v57  ;;  %v2991_v60 = vsel %vm2869_vm5, %v2990_v50, %v2986_v38 }
 0x2e4   : > { %v2805_v41 = vpop.permute.xlu0 %2804  ;;  %v2826_v36 = vpop.permute.xlu1 %2825 }
 0x2e5   : > { %v2961_v61 = vrot.slane %v2805_v41, %v2881_v8  ;;  %v2995_v12 = vrot.slane %v2826_v36, %v2874_v2 }
 0x2e7   : > { %v2962_v20 = vsel %vm2883_vm7, %v2961_v61, %v2957_v25  ;;  %v2996_v39 = vsel %vm2876_vm6, %v2995_v12, %v2991_v60 }
 0x2e8   : > { %v3005_v14 = vsel %vm3004_vm9, %v2962_v20, %v3003_v21 }
 0x2ec   : > { %v2829_v63 = vpop.permute.xlu0 %2828 }
 0x2ed   : > { %v3000_v19 = vrot.slane %v2829_v63, %v2881_v8 }
 0x2ef   : > { %v3001_v47 = vsel %vm2883_vm7, %v3000_v19, %v2996_v39 }
 0x2f0   : > { %v3007_v30 = vsel %vm3006_vm10, %v3001_v47, %v3005_v14 }
 0x2f1   : > { %3204 = vmatpush3.msk.msra.mxu0 %vm3012_vm11, %v3007_v30 }
 0x2f2   : > { %3206 = vmatmul.mubr.msk.f32.vlgmr.msra.gmra.mxu0 %vm3008_vm12, %v2061_v11 }
 0x3b2   : > { %v3081_v55 = vpop.f32.mrf.mxu0 }
 0x3b3   : > { %3086 = vst.msk [vmem:[%s179_s16] sm:$0xff] %vm3085_vm13, %v3081_v55 }
 0x3b4   : > { %v3207_v62 = vpop.f32.mrf.mxu0 }
 0x3b5   : > { %3335 = shalt.err (!%p3332_p6)
}
 0x3b6   : > { %s3336_s30 = scalar_lea.hbm %s5081_s26, 128  ;;  %s3340_s4 = scalar_lea.hbm %s5131_s2, 256 }
 0x3b7   : > { %p3337_p7 = scmp.ne.s32.totalorder %s5081_s26, %s3336_s30  ;;  %p3341_p13 = scmp.lt.s32.totalorder %s5081_s26, %s5131_s2 }
 0x3b8   : > { %p3342_p2 = scmp.lt.s32.totalorder %s3340_s4, %s3336_s30 }
 0x3b9   : > { %p3338_p10 = pnand %p3337_p7, %p3486_p9 }
 0x3ba   : > { %p3343_p8 = por %p3342_p2, %p3341_p13 }
 0x3bb   : > { %p3339_p4 = pneg %p3338_p10 }
 0x3bd   : > { %p3344_p12 = pnand %p3343_p8, %p3339_p4 }
 0x3bf   : > { %3347 = shalt.err (!%p3344_p12)
}
 0x3c0   : > { %3210 = dma.vmem_to_hbm [thread:$0]  (%p3486_p9), %s5083_s18, 128, %s5081_s26, %s3088_s27  }
 0x3c1 PF: > { %s3114_s7 = sand.u32 1, %s3382_s9   ;;  %p5432_p0 = scmp.ge.s32.totalorder %s3402_s14, 2 }
 0x3c2   : > { %s3115_s8 = scalar_lea.sflag [#allocation4], %s3114_s7 }
 0x3c3   : > { %p3217_p1 = pnand %p5432_p0, %p3493_p11 }
 0x3c5   : > { %p3218_p3 = pneg %p3217_p1 }
 0x3c7   : > { %3377 = dma.done.wait (%p3218_p3), %s3115_s8, 128  }
 0x3c8   : > { %3379 = vsyncadd (%p3218_p3), %s3115_s8, 4294967168  ;;  %s18_s14 = sadd.s32 1, %s3402_s14   ;;  %s5433_s9 = smov %s3386_s10 }
 0x3c9   : > { %p15_p5 = scmp.ge.s32.totalorder %s18_s14, 4   ;;  %s5434_s10 = smov %s3390_s11 }
 0x3ca   : > { %s5435_s11 = smov %s3491_s23  ;;  %s5436_s12 = smov %s3398_s13 }
 0x3cb   : > { %s5437_s13 = smov %s5439_s17  ;;  %17 = sbr.rel (!%p15_p5) target bundleno = 6 (0x6), region = 73 }
 0x3d0   :  { %3120 = vsyncpa [#allocation3], 1 }
 0x3d1   :  { %3122 = vsyncpa [#allocation3 + $0x1], 1 }
 0x3d2   :  { %3123 = vsyncpa [#allocation4], 1 }
 0x3d3   :  { %3125 = vsyncpa [#allocation4 + $0x1], 1 }

// kernel: tpu_custom_call.1
= control target key start
LH: loop header
LB: loop body
LE: loop exit
PB: predicated region body
PF: predicated region fallthrough
CT: control target
= control target key end

     0   :  { %7 = vsyncpa [#allocation3], 0  ;;  %s619_s0 = inlined_call_operand.vmem [shape: f32[2,4,64], index: 0, kind: input, shape index: {}]   ;;  %s620_s1 = inlined_call_operand.vmem [shape: f32[8,4], index: 1, kind: input, shape index: {}]   ;;  %s621_s2 = inlined_call_operand.hbm [shape: f32[2,8,64], index: 2, kind: output, shape index: {}]  }
   0x1   :  { %9 = vsyncpa [#allocation3 + $0x1], 0  ;;  %s505_s9 = smov 0   ;;  %s507_s10 = smov 0  }
   0x2   :  { %s509_s11 = smov 0   ;;  %s511_s12 = smov 0  }
   0x3   :  { %s513_s13 = smov 0   ;;  %s515_s14 = smov 0  }
   0x4 LB: > { %s332_s15 = sadd.s32 4294967295, %s485_s14   ;;  %s333_s16 = sadd.s32 4294967294, %s485_s14   ;;  %s485_s14 = sphi %s515_s14, %s15_s14   ;;  %s481_s13 = sphi %s513_s13, %s628_s13   ;;  %s477_s12 = sphi %s511_s12, %s627_s12   ;;  %s473_s11 = sphi %s509_s11, %s626_s11   ;;  %s469_s10 = sphi %s507_s10, %s625_s10   ;;  %s465_s9 = sphi %s505_s9, %s624_s9  }
   0x5   : > { %s27_s17 = sadd.s32 1, %s481_s13  ;;  %s85_s18 = sadd.s32 1, %s473_s11 }
   0x6   : > { %p29_p0 = scmp.ge.s32.totalorder %s27_s17, 2  ;;  %p95_p1 = scmp.ne.s32.totalorder %s473_s11, %s469_s10 }
   0x7   : > { %p96_p2 = scmp.eq.s32.totalorder %s332_s15, 1  ;;  %p101_p3 = scmp.ne.s32.totalorder %s469_s10, %s465_s9 }
   0x8   : > { %s630_s17 = smov (%p29_p0, %s27_s17), 0  ;;  %p102_p5 = scmp.eq.s32.totalorder %s333_s16, 1 }
   0x9   : > { %p545_p4 = por %p96_p2, %p95_p1  ;;  %s80_s20 = ssub.s32 %s481_s13, %s630_s17 }
   0xa   : > { %p336_p6 = scmp.ge.s32.totalorder %s485_s14, 1  ;;  %p83_p7 = scmp.eq.s32.totalorder %s80_s20, 0 }
   0xb   : > { %p552_p8 = por %p102_p5, %p101_p3  ;;  %p133_p9 = scmp.lt.s32.totalorder %s485_s14, 3 }
   0xc   : > { %s558_s22 = scalar_select %p83_p7, %s473_s11, %s85_s18  }
   0xd   : > { %p134_p10 = pnand %p336_p6, %p133_p9 }
   0xe   : > { %p157_p11 = scmp.lt.s32.totalorder (!%p134_p10), %s477_s12, 1  ;;  %s154_s30 = sand.u32 (!%p134_p10), 1, %s469_s10  }
   0xf   : > { %137 = sbr.rel (%p134_p10) target bundleno = 233 (0xe9), region = 28  ;;  %s337_s3 = sshll.u32 (!%p134_p10), %s154_s30, 3 }
  0x10   : > { %s342_s4 = sshll.u32 (!%p134_p10), %s477_s12, 7  ;;  %s156_s5 = scalar_lea.vmem (!%p134_p10), [#allocation2], %s337_s3 }
  0x11   : > { %s261_s6 = sshll.u32 (!%p134_p10), %s156_s5, 4  ;;  %s573_s15 = scalar_lea.hbm (!%p134_p10), %s621_s2, %s342_s4  ;;  %s575_s6 = int_to_ptr.vmem [resolvable:$true] %s261_s6 }
  0x12   : > { %s247_s16 = scalar_lea.sflag (!%p134_p10), [#allocation3], %s154_s30  ;;  %s409_s18 = scalar_lea.vmem (!%p134_p10), %s575_s6, 128 }
  0x13   : > { %p410_p12 = scmp.ne.s32.totalorder (!%p134_p10), %s575_s6, %s409_s18 }
  0x14   : > { %v487_v0 = vmov 0.0   ;;  %vm488_vm0 = vmmov 0   ;;  %s158_s23 = scalar_select %p157_p11, %s477_s12, 1  ;;  %vm170_vm1 = vcmask 1043456   ;;  %v164_v1 = vld [vmem:[%s620_s1] sm:$0xff]  ;;  %vm166_vm2 = vcmask 31744  }
  0x15   : > { %347 = vmatprep.subr.mxu0 %v487_v0  ;;  %349 = vmatprep.mubr.msk.f32.mxu0 %vm488_vm0, %v487_v0  ;;  %vm244_vm3 = vcmask 523264   ;;  %p411_p13 = pnand %p410_p12, %p545_p4  ;;  %s489_s12 = smov [#allocation2]  }
  0x16   : > { %s338_s24 = sshll.u32 %s158_s23, 2  ;;  %s413_s20 = sshll.u32 %s489_s12, 4  ;;  %s414_s20 = int_to_ptr.vmem [resolvable:$false] %s413_s20 }
  0x17   : > { %s163_s27 = scalar_lea.vmem %s619_s0, %s338_s24  ;;  %p412_p0 = pneg %p411_p13 }
  0x18   : > { %v165_v2 = vld [vmem:[%s163_s27] sm:$0xf]  ;;  %s415_s23 = scalar_lea.vmem %s414_s20, 256  ;;  %p416_p1 = scmp.lt.s32.totalorder %s575_s6, %s414_s20 }
  0x19   : > { %348 = vmatpush3.msk.msra.mxu0 %vm170_vm1, %v165_v2  ;;  %p417_p2 = scmp.lt.s32.totalorder %s415_s23, %s409_s18 }
  0x1a   : > { %350 = vmatmul.mubr.msk.f32.vlgmr.msra.gmra.mxu0 %vm166_vm2, %v164_v1 }
  0x1b   : > { %p418_p3 = por %p417_p2, %p416_p1 }
  0x1d   : > { %p419_p5 = pnand %p418_p3, %p412_p0 }
  0xda   : > { %v240_v3 = vpop.f32.mrf.mxu0 }
  0xdb   : > { %245 = vst.msk [vmem:[%s156_s5] sm:$0xff] %vm244_vm3, %v240_v3 }
  0xdc   : > { %v351_v4 = vpop.f32.mrf.mxu0 }
  0xdd   : > { %422 = shalt.err (!%p419_p5)
}
  0xde   : > { %s423_s24 = scalar_lea.hbm %s573_s15, 128  ;;  %s427_s27 = scalar_lea.hbm %s621_s2, 256 }
  0xdf   : > { %p424_p6 = scmp.ne.s32.totalorder %s573_s15, %s423_s24  ;;  %p428_p10 = scmp.lt.s32.totalorder %s573_s15, %s621_s2 }
  0xe0   : > { %p429_p11 = scmp.lt.s32.totalorder %s427_s27, %s423_s24 }
  0xe1   : > { %p425_p7 = pnand %p424_p6, %p545_p4 }
  0xe2   : > { %p430_p12 = por %p429_p11, %p428_p10 }
  0xe3   : > { %p426_p9 = pneg %p425_p7 }
  0xe5   : > { %p431_p13 = pnand %p430_p12, %p426_p9 }
  0xe7   : > { %434 = shalt.err (!%p431_p13)
}
  0xe8   : > { %352 = dma.vmem_to_hbm [thread:$0]  (%p545_p4), %s575_s6, 128, %s573_s15, %s247_s16  }
  0xe9 PF: > { %p358_p0 = scmp.ge.s32.totalorder %s485_s14, 2  ;;  %s273_s30 = sand.u32 1, %s465_s9  }
  0xea   : > { %s274_s3 = scalar_lea.sflag [#allocation3], %s273_s30 }
  0xeb   : > { %p355_p1 = pnand %p358_p0, %p552_p8 }
  0xed   : > { %p356_p2 = pneg %p355_p1 }
  0xef   : > { %460 = dma.done.wait (%p356_p2), %s274_s3, 128  }
  0xf0   : > { %462 = vsyncadd (%p356_p2), %s274_s3, 4294967168  ;;  %s15_s14 = sadd.s32 1, %s485_s14   ;;  %s624_s9 = smov %s469_s10 }
  0xf1   : > { %p12_p3 = scmp.ge.s32.totalorder %s15_s14, 4   ;;  %s625_s10 = smov %s473_s11 }
  0xf2   : > { %s626_s11 = smov %s558_s22  ;;  %s627_s12 = smov %s481_s13 }
  0xf3   : > { %s628_s13 = smov %s630_s17  ;;  %14 = sbr.rel (!%p12_p3) target bundleno = 4 (0x4), region = 63 }
  0xf8   :  { %279 = vsyncpa [#allocation3], 1 }
  0xf9   :  { %281 = vsyncpa [#allocation3 + $0x1], 1 }

</bundles_post_ra>
